<compile_context>
chip_gen: v7x
topology: tpu7x:2x2x1
jax: 0.10.0
libtpu: 0.0.40
codegen_flags: <defaults>
</compile_context>

<pallas_src>
import functools

import jax
import jax.numpy as jnp
from jax.experimental import pallas as pl
from jax.experimental.pallas import tpu as pltpu


def _round_up(x, m):
    return (x + m - 1) // m * m


def _vmem_bytes_estimate(tile_h, w, cp, wpad):
    r3 = (tile_h + 2) * wpad
    return (2 * (r3 * cp * 2 + 4 * tile_h * w * cp * 4)  # double-buffered in/out blocks
            + r3 * 3 * cp * 2                             # column-shift staging scratch
            + 2 * tile_h * wpad * cp * 4                  # live f32 matmul results
            + 16 * cp * cp * 2)                           # resident phase weights


def _choose_tile_h(h, w, cp, wpad, budget=20 * 2**20):
    # Prefer >= 2 row tiles so both v7x TensorCores get work even at batch = 1,
    # and pick the largest divisor of H that keeps VMEM under budget.
    cap = max(1, h // 2)
    best = 1
    for th in range(1, cap + 1):
        if h % th == 0 and _vmem_bytes_estimate(th, w, cp, wpad) <= budget:
            best = th
    return best


def _phase_weights(weight, cp):
    """OIHW (c,c,3,3) -> (4, 2, 2*cp, cp) bf16: phase-decomposed, K-stacked over dx.

    For phase (py, px) and 2x2 tap (dy, dx) on the original grid, the effective
    weight is the sum of the original 3x3 taps that land on that source pixel
    after nearest-2x upsampling.
    """
    c = weight.shape[0]
    a = jnp.transpose(weight, (2, 3, 1, 0))  # (ky, kx, cin, cout)
    groups = {(0, 0): (0,), (0, 1): (1, 2), (1, 0): (0, 1), (1, 1): (2,)}

    def tap(py, px, dy, dx):
        m = jnp.zeros((c, c), weight.dtype)
        for ky in groups[(py, dy)]:
            for kx in groups[(px, dx)]:
                m = m + a[ky, kx]
        return jnp.pad(m, ((0, cp - c), (0, cp - c)))

    phases = []
    for py in range(2):
        for px in range(2):
            per_dy = [jnp.concatenate([tap(py, px, dy, 0), tap(py, px, dy, 1)], axis=0)
                      for dy in range(2)]
            phases.append(jnp.stack(per_dy, axis=0))           # (2, 2*cp, cp)
    return jnp.stack(phases, axis=0).astype(jnp.bfloat16)       # (4, 2, 2*cp, cp)


def _upsample_conv_kernel(x_ref, w_ref, b_ref, o_ref, stg_ref, *,
                          tile_h, wpad, w_out, cp):
    """One (batch, row-tile) grid step.

    x_ref:   (1, 1, (tile_h+2)*wpad, cp) bf16  padded input rows (row-major flattened)
    w_ref:   (4, 2, 2*cp, cp)            bf16  per-phase, per-dy, dx-K-stacked weights
    b_ref:   (1, cp)                     f32   bias
    o_ref:   (1, 4, tile_h, w_out, cp)   f32   per-phase outputs on the original grid
    stg_ref: ((tile_h+2)*wpad, 3*cp)     bf16  column-shift staging (sx = 0, 1, 2)
    """
    r3 = (tile_h + 2) * wpad
    rw = tile_h * wpad
    rcopy = r3 - 2  # the last 2 rows would only feed discarded (wrap) columns

    # Stage the three column shifts once at lane-/sublane-aligned destinations so
    # every matmul operand below is an aligned VMEM slice (no implicit realigns).
    for sx in range(3):
        stg_ref[0:rcopy, sx * cp:(sx + 1) * cp] = x_ref[0, 0, sx:sx + rcopy, :]

    bias = b_ref[...]  # (1, cp) f32

    for py in range(2):
        for px in range(2):
            p = 2 * py + px
            # dy = 0 / 1 row-shifted windows; the two dx taps share one 2*cp K block.
            lhs0 = stg_ref[py * wpad:py * wpad + rw, px * cp:(px + 2) * cp]
            lhs1 = stg_ref[(py + 1) * wpad:(py + 1) * wpad + rw, px * cp:(px + 2) * cp]
            acc = jnp.dot(lhs0, w_ref[p, 0], preferred_element_type=jnp.float32)
            acc = acc + jnp.dot(lhs1, w_ref[p, 1], preferred_element_type=jnp.float32)
            acc = acc + bias
            # Drop wrap columns (j >= w_out) in VMEM; store a lane-dense (th, W, Cp) block.
            val = acc.reshape(tile_h, wpad, cp)[:, :w_out, :]
            o_ref[0, p] = val.astype(o_ref.dtype)


def upsample_forward(x_nchw, temb, weight, bias, *, tile_h=None):
    """Forward of UpSample: F.interpolate(x, 2, 'nearest') -> Conv2d(C, C, 3, 1, 1).

    x_nchw: (N, C, H, W); weight: (C, C, 3, 3) OIHW; bias: (C,).  temb is unused,
    matching the PyTorch module.
    """
    del temb  # unused by the PyTorch module as well
    n, c, h, w = x_nchw.shape
    cp = _round_up(c, 128)          # lane-dense channel dim
    wpad = _round_up(w + 2, 8)      # sublane-aligned padded width
    if tile_h is None:
        tile_h = _choose_tile_h(h, w, cp, wpad)
    assert h % tile_h == 0, (h, tile_h)
    t_tiles = h // tile_h
    r3 = (tile_h + 2) * wpad

    # ---- glue on the ORIGINAL-resolution input only (no upsampled intermediate) ----
    xt = jnp.transpose(x_nchw, (0, 2, 3, 1))                               # NHWC
    xt = jnp.pad(xt, ((0, 0), (1, 1), (1, wpad - w - 1), (0, cp - c)))     # (n, h+2, wpad, cp)
    xt = xt.astype(jnp.bfloat16)
    # Overlapping (tile_h + 2)-row windows (2-row halo), flattened row-major per tile.
    row_idx = jnp.arange(t_tiles)[:, None] * tile_h + jnp.arange(tile_h + 2)[None, :]
    xt = xt[:, row_idx].reshape(n, t_tiles, r3, cp)

    w4 = _phase_weights(weight, cp)                                        # (4,2,2cp,cp) bf16
    b2 = jnp.pad(bias, (0, cp - c)).reshape(1, cp).astype(jnp.float32)

    kernel = functools.partial(_upsample_conv_kernel, tile_h=tile_h, wpad=wpad,
                               w_out=w, cp=cp)

    flops = 2 * n * t_tiles * 4 * 2 * (tile_h * wpad) * (2 * cp) * cp
    bytes_accessed = int(xt.size * 2 + w4.size * 2 + b2.size * 4
                         + n * 4 * h * w * cp * 4)
    vmem_limit = int(min(64 * 2**20,
                         max(2 * _vmem_bytes_estimate(tile_h, w, cp, wpad), 8 * 2**20)))

    out5 = pl.pallas_call(
        kernel,
        out_shape=jax.ShapeDtypeStruct((n, 4, h, w, cp), x_nchw.dtype),
        grid_spec=pltpu.PrefetchScalarGridSpec(
            num_scalar_prefetch=0,
            grid=(n, t_tiles),
            in_specs=[
                pl.BlockSpec((1, 1, r3, cp), lambda i, t: (i, t, 0, 0)),
                pl.BlockSpec((4, 2, 2 * cp, cp), lambda i, t: (0, 0, 0, 0)),
                pl.BlockSpec((1, cp), lambda i, t: (0, 0)),
            ],
            out_specs=pl.BlockSpec((1, 4, tile_h, w, cp),
                                   lambda i, t: (i, 0, t, 0, 0)),
            scratch_shapes=[pltpu.VMEM((r3, 3 * cp), jnp.bfloat16)],
        ),
        compiler_params=pltpu.CompilerParams(
            dimension_semantics=("parallel", "parallel"),
            vmem_limit_bytes=vmem_limit),
        cost_estimate=pl.CostEstimate(flops=flops, transcendentals=0,
                                      bytes_accessed=bytes_accessed),
    )(xt, w4, b2)

    # ---- glue: interleave the 4 phases and restore NCHW (single transpose pass) ----
    out6 = out5.reshape(n, 2, 2, h, w, cp)            # (n, py, px, i, j, ch)
    out = jnp.transpose(out6, (0, 5, 3, 1, 4, 2))     # (n, ch, i, py, j, px)
    out = out.reshape(n, cp, 2 * h, 2 * w)
    return out[:, :c]


if __name__ == "__main__":
    key = jax.random.PRNGKey(0)
    n, c, h, w = 2, 4, 16, 16
    kx, kw, kt = jax.random.split(key, 3)

    x = jax.random.normal(kx, (n, c, h, w), jnp.float32)
    temb = jax.random.normal(kt, (n, 32), jnp.float32)        # unused by forward

    # Deterministic parameter init matching UpSample.initialize():
    # xavier_uniform_ on the conv weight, zeros on the bias.
    fan_in = c * 3 * 3
    fan_out = c * 3 * 3
    limit = (6.0 / (fan_in + fan_out)) ** 0.5
    weight = jax.random.uniform(kw, (c, c, 3, 3), jnp.float32, -limit, limit)
    bias = jnp.zeros((c,), jnp.float32)

    out = jax.block_until_ready(upsample_forward(x, temb, weight, bias))
    assert out.shape == (n, c, 2 * h, 2 * w), out.shape

    # Plain-JAX f32 reference (nearest upsample + SAME 3x3 conv in NCHW/OIHW).
    x_up = jnp.repeat(jnp.repeat(x, 2, axis=2), 2, axis=3)
    ref = jax.lax.conv_general_dilated(
        x_up, weight, window_strides=(1, 1), padding="SAME",
        dimension_numbers=("NCHW", "OIHW", "NCHW")) + bias[None, :, None, None]
    max_err = float(jnp.max(jnp.abs(out - ref)))
    # bf16 operands / f32 accumulation -> loosen tolerance vs the f32 reference.
    assert max_err < 5e-2, max_err

    print("KERNEL_OK")
</pallas_src>

<mosaic_0001>
module attributes {stable_mosaic.version = 11 : i64} {
  func.func @_upsample_conv_kernel(%arg0: i32, %arg1: i32, %arg2: memref<1x1x240x128xbf16, #tpu.memory_space<vmem>>, %arg3: memref<4x2x256x128xbf16, #tpu.memory_space<vmem>>, %arg4: memref<1x128xf32, #tpu.memory_space<vmem>>, %arg5: memref<1x4x8x16x128xf32, #tpu.memory_space<vmem>>, %arg6: memref<240x384xbf16, #tpu.memory_space<vmem>>) attributes {dimension_semantics = [#tpu.dimension_semantics<parallel>, #tpu.dimension_semantics<parallel>], iteration_bounds = array<i64: 2, 2>, scalar_prefetch = 0 : i64, scratch_operands = 1 : i64, tpu.core_type = #tpu.core_type<tc>, window_params = [{transform_indices = @transform_0, window_bounds = array<i64: 1, 1, 240, 128>}, {pipeline_mode = #tpu.pipeline_mode<synchronous>, transform_indices = @transform_1, window_bounds = array<i64: 4, 2, 256, 128>}, {pipeline_mode = #tpu.pipeline_mode<synchronous>, transform_indices = @transform_2, window_bounds = array<i64: 1, 128>}, {transform_indices = @transform_3, window_bounds = array<i64: 1, 4, 8, 16, 128>}]} {
    %c0 = arith.constant 0 : index
    %c0_0 = arith.constant 0 : index
    %c0_1 = arith.constant 0 : index
    %c0_2 = arith.constant 0 : index
    %0 = vector.load %arg2[%c0, %c0_0, %c0_1, %c0_2] : memref<1x1x240x128xbf16, #tpu.memory_space<vmem>>, vector<1x1x238x128xbf16>
    %1 = vector.shape_cast %0 : vector<1x1x238x128xbf16> to vector<238x128xbf16>
    %c0_3 = arith.constant 0 : index
    %c0_4 = arith.constant 0 : index
    %2 = vector.load %arg6[%c0_3, %c0_4] : memref<240x384xbf16, #tpu.memory_space<vmem>>, vector<238x128xbf16>
    tpu.vector_store %arg6[%c0_3, %c0_4], %1 {strides = array<i32>} : memref<240x384xbf16, #tpu.memory_space<vmem>>, vector<238x128xbf16>,
    %c0_5 = arith.constant 0 : index
    %c0_6 = arith.constant 0 : index
    %c1 = arith.constant 1 : index
    %c0_7 = arith.constant 0 : index
    %3 = vector.load %arg2[%c0_5, %c0_6, %c1, %c0_7] : memref<1x1x240x128xbf16, #tpu.memory_space<vmem>>, vector<1x1x238x128xbf16>
    %4 = vector.shape_cast %3 : vector<1x1x238x128xbf16> to vector<238x128xbf16>
    %c0_8 = arith.constant 0 : index
    %c128 = arith.constant 128 : index
    %5 = vector.load %arg6[%c0_8, %c128] : memref<240x384xbf16, #tpu.memory_space<vmem>>, vector<238x128xbf16>
    tpu.vector_store %arg6[%c0_8, %c128], %4 {strides = array<i32>} : memref<240x384xbf16, #tpu.memory_space<vmem>>, vector<238x128xbf16>,
    %c0_9 = arith.constant 0 : index
    %c0_10 = arith.constant 0 : index
    %c2 = arith.constant 2 : index
    %c0_11 = arith.constant 0 : index
    %6 = vector.load %arg2[%c0_9, %c0_10, %c2, %c0_11] : memref<1x1x240x128xbf16, #tpu.memory_space<vmem>>, vector<1x1x238x128xbf16>
    %7 = vector.shape_cast %6 : vector<1x1x238x128xbf16> to vector<238x128xbf16>
    %c0_12 = arith.constant 0 : index
    %c256 = arith.constant 256 : index
    %8 = vector.load %arg6[%c0_12, %c256] : memref<240x384xbf16, #tpu.memory_space<vmem>>, vector<238x128xbf16>
    tpu.vector_store %arg6[%c0_12, %c256], %7 {strides = array<i32>} : memref<240x384xbf16, #tpu.memory_space<vmem>>, vector<238x128xbf16>,
    %c0_13 = arith.constant 0 : index
    %c0_14 = arith.constant 0 : index
    %9 = vector.load %arg4[%c0_13, %c0_14] : memref<1x128xf32, #tpu.memory_space<vmem>>, vector<1x128xf32>
    %c0_15 = arith.constant 0 : index
    %c0_16 = arith.constant 0 : index
    %10 = vector.load %arg6[%c0_15, %c0_16] : memref<240x384xbf16, #tpu.memory_space<vmem>>, vector<192x256xbf16>
    %c24 = arith.constant 24 : index
    %c0_17 = arith.constant 0 : index
    %11 = vector.load %arg6[%c24, %c0_17] : memref<240x384xbf16, #tpu.memory_space<vmem>>, vector<192x256xbf16>
    %c0_18 = arith.constant 0 : index
    %c0_19 = arith.constant 0 : index
    %c0_20 = arith.constant 0 : index
    %c0_21 = arith.constant 0 : index
    %12 = vector.load %arg3[%c0_18, %c0_19, %c0_20, %c0_21] : memref<4x2x256x128xbf16, #tpu.memory_space<vmem>>, vector<1x1x256x128xbf16>
    %13 = vector.shape_cast %12 : vector<1x1x256x128xbf16> to vector<256x128xbf16>
    %cst = arith.constant dense<0.000000e+00> : vector<192x128xf32>
    %14 = tpu.matmul %10, %13, %cst {dimension_numbers = #tpu.dot_dimension_numbers<[1], [0], [0], [1], [0, 0, 1, 1], [], []>} : vector<192x256xbf16>, vector<256x128xbf16>, vector<192x128xf32> -> vector<192x128xf32>
    %c0_22 = arith.constant 0 : index
    %c1_23 = arith.constant 1 : index
    %c0_24 = arith.constant 0 : index
    %c0_25 = arith.constant 0 : index
    %15 = vector.load %arg3[%c0_22, %c1_23, %c0_24, %c0_25] : memref<4x2x256x128xbf16, #tpu.memory_space<vmem>>, vector<1x1x256x128xbf16>
    %16 = vector.shape_cast %15 : vector<1x1x256x128xbf16> to vector<256x128xbf16>
    %cst_26 = arith.constant dense<0.000000e+00> : vector<192x128xf32>
    %17 = tpu.matmul %11, %16, %cst_26 {dimension_numbers = #tpu.dot_dimension_numbers<[1], [0], [0], [1], [0, 0, 1, 1], [], []>} : vector<192x256xbf16>, vector<256x128xbf16>, vector<192x128xf32> -> vector<192x128xf32>
    %18 = arith.addf %14, %17 : vector<192x128xf32>
    %19 = vector.broadcast %9 : vector<1x128xf32> to vector<192x128xf32>
    %20 = arith.addf %18, %19 : vector<192x128xf32>
    %21 = vector.shape_cast %20 : vector<192x128xf32> to vector<8x24x128xf32>
    %22 = vector.extract_strided_slice %21 {offsets = [0, 0, 0], sizes = [8, 16, 128], strides = [1, 1, 1]} : vector<8x24x128xf32> to vector<8x16x128xf32>
    %c0_27 = arith.constant 0 : index
    %c0_28 = arith.constant 0 : index
    %c0_29 = arith.constant 0 : index
    %c0_30 = arith.constant 0 : index
    %c0_31 = arith.constant 0 : index
    %23 = vector.load %arg5[%c0_27, %c0_28, %c0_29, %c0_30, %c0_31] : memref<1x4x8x16x128xf32, #tpu.memory_space<vmem>>, vector<1x1x8x16x128xf32>
    %24 = vector.shape_cast %23 : vector<1x1x8x16x128xf32> to vector<8x16x128xf32>
    %25 = vector.shape_cast %22 : vector<8x16x128xf32> to vector<1x1x8x16x128xf32>
    tpu.vector_store %arg5[%c0_27, %c0_28, %c0_29, %c0_30, %c0_31], %25 {strides = array<i32>} : memref<1x4x8x16x128xf32, #tpu.memory_space<vmem>>, vector<1x1x8x16x128xf32>,
    %c0_32 = arith.constant 0 : index
    %c128_33 = arith.constant 128 : index
    %26 = vector.load %arg6[%c0_32, %c128_33] : memref<240x384xbf16, #tpu.memory_space<vmem>>, vector<192x256xbf16>
    %c24_34 = arith.constant 24 : index
    %c128_35 = arith.constant 128 : index
    %27 = vector.load %arg6[%c24_34, %c128_35] : memref<240x384xbf16, #tpu.memory_space<vmem>>, vector<192x256xbf16>
    %c1_36 = arith.constant 1 : index
    %c0_37 = arith.constant 0 : index
    %c0_38 = arith.constant 0 : index
    %c0_39 = arith.constant 0 : index
    %28 = vector.load %arg3[%c1_36, %c0_37, %c0_38, %c0_39] : memref<4x2x256x128xbf16, #tpu.memory_space<vmem>>, vector<1x1x256x128xbf16>
    %29 = vector.shape_cast %28 : vector<1x1x256x128xbf16> to vector<256x128xbf16>
    %cst_40 = arith.constant dense<0.000000e+00> : vector<192x128xf32>
    %30 = tpu.matmul %26, %29, %cst_40 {dimension_numbers = #tpu.dot_dimension_numbers<[1], [0], [0], [1], [0, 0, 1, 1], [], []>} : vector<192x256xbf16>, vector<256x128xbf16>, vector<192x128xf32> -> vector<192x128xf32>
    %c1_41 = arith.constant 1 : index
    %c1_42 = arith.constant 1 : index
    %c0_43 = arith.constant 0 : index
    %c0_44 = arith.constant 0 : index
    %31 = vector.load %arg3[%c1_41, %c1_42, %c0_43, %c0_44] : memref<4x2x256x128xbf16, #tpu.memory_space<vmem>>, vector<1x1x256x128xbf16>
    %32 = vector.shape_cast %31 : vector<1x1x256x128xbf16> to vector<256x128xbf16>
    %cst_45 = arith.constant dense<0.000000e+00> : vector<192x128xf32>
    %33 = tpu.matmul %27, %32, %cst_45 {dimension_numbers = #tpu.dot_dimension_numbers<[1], [0], [0], [1], [0, 0, 1, 1], [], []>} : vector<192x256xbf16>, vector<256x128xbf16>, vector<192x128xf32> -> vector<192x128xf32>
    %34 = arith.addf %30, %33 : vector<192x128xf32>
    %35 = vector.broadcast %9 : vector<1x128xf32> to vector<192x128xf32>
    %36 = arith.addf %34, %35 : vector<192x128xf32>
    %37 = vector.shape_cast %36 : vector<192x128xf32> to vector<8x24x128xf32>
    %38 = vector.extract_strided_slice %37 {offsets = [0, 0, 0], sizes = [8, 16, 128], strides = [1, 1, 1]} : vector<8x24x128xf32> to vector<8x16x128xf32>
    %c0_46 = arith.constant 0 : index
    %c1_47 = arith.constant 1 : index
    %c0_48 = arith.constant 0 : index
    %c0_49 = arith.constant 0 : index
    %c0_50 = arith.constant 0 : index
    %39 = vector.load %arg5[%c0_46, %c1_47, %c0_48, %c0_49, %c0_50] : memref<1x4x8x16x128xf32, #tpu.memory_space<vmem>>, vector<1x1x8x16x128xf32>
    %40 = vector.shape_cast %39 : vector<1x1x8x16x128xf32> to vector<8x16x128xf32>
    %41 = vector.shape_cast %38 : vector<8x16x128xf32> to vector<1x1x8x16x128xf32>
    tpu.vector_store %arg5[%c0_46, %c1_47, %c0_48, %c0_49, %c0_50], %41 {strides = array<i32>} : memref<1x4x8x16x128xf32, #tpu.memory_space<vmem>>, vector<1x1x8x16x128xf32>,
    %c24_51 = arith.constant 24 : index
    %c0_52 = arith.constant 0 : index
    %42 = vector.load %arg6[%c24_51, %c0_52] : memref<240x384xbf16, #tpu.memory_space<vmem>>, vector<192x256xbf16>
    %c48 = arith.constant 48 : index
    %c0_53 = arith.constant 0 : index
    %43 = vector.load %arg6[%c48, %c0_53] : memref<240x384xbf16, #tpu.memory_space<vmem>>, vector<192x256xbf16>
    %c2_54 = arith.constant 2 : index
    %c0_55 = arith.constant 0 : index
    %c0_56 = arith.constant 0 : index
    %c0_57 = arith.constant 0 : index
    %44 = vector.load %arg3[%c2_54, %c0_55, %c0_56, %c0_57] : memref<4x2x256x128xbf16, #tpu.memory_space<vmem>>, vector<1x1x256x128xbf16>
    %45 = vector.shape_cast %44 : vector<1x1x256x128xbf16> to vector<256x128xbf16>
    %cst_58 = arith.constant dense<0.000000e+00> : vector<192x128xf32>
    %46 = tpu.matmul %42, %45, %cst_58 {dimension_numbers = #tpu.dot_dimension_numbers<[1], [0], [0], [1], [0, 0, 1, 1], [], []>} : vector<192x256xbf16>, vector<256x128xbf16>, vector<192x128xf32> -> vector<192x128xf32>
    %c2_59 = arith.constant 2 : index
    %c1_60 = arith.constant 1 : index
    %c0_61 = arith.constant 0 : index
    %c0_62 = arith.constant 0 : index
    %47 = vector.load %arg3[%c2_59, %c1_60, %c0_61, %c0_62] : memref<4x2x256x128xbf16, #tpu.memory_space<vmem>>, vector<1x1x256x128xbf16>
    %48 = vector.shape_cast %47 : vector<1x1x256x128xbf16> to vector<256x128xbf16>
    %cst_63 = arith.constant dense<0.000000e+00> : vector<192x128xf32>
    %49 = tpu.matmul %43, %48, %cst_63 {dimension_numbers = #tpu.dot_dimension_numbers<[1], [0], [0], [1], [0, 0, 1, 1], [], []>} : vector<192x256xbf16>, vector<256x128xbf16>, vector<192x128xf32> -> vector<192x128xf32>
    %50 = arith.addf %46, %49 : vector<192x128xf32>
    %51 = vector.broadcast %9 : vector<1x128xf32> to vector<192x128xf32>
    %52 = arith.addf %50, %51 : vector<192x128xf32>
    %53 = vector.shape_cast %52 : vector<192x128xf32> to vector<8x24x128xf32>
    %54 = vector.extract_strided_slice %53 {offsets = [0, 0, 0], sizes = [8, 16, 128], strides = [1, 1, 1]} : vector<8x24x128xf32> to vector<8x16x128xf32>
    %c0_64 = arith.constant 0 : index
    %c2_65 = arith.constant 2 : index
    %c0_66 = arith.constant 0 : index
    %c0_67 = arith.constant 0 : index
    %c0_68 = arith.constant 0 : index
    %55 = vector.load %arg5[%c0_64, %c2_65, %c0_66, %c0_67, %c0_68] : memref<1x4x8x16x128xf32, #tpu.memory_space<vmem>>, vector<1x1x8x16x128xf32>
    %56 = vector.shape_cast %55 : vector<1x1x8x16x128xf32> to vector<8x16x128xf32>
    %57 = vector.shape_cast %54 : vector<8x16x128xf32> to vector<1x1x8x16x128xf32>
    tpu.vector_store %arg5[%c0_64, %c2_65, %c0_66, %c0_67, %c0_68], %57 {strides = array<i32>} : memref<1x4x8x16x128xf32, #tpu.memory_space<vmem>>, vector<1x1x8x16x128xf32>,
    %c24_69 = arith.constant 24 : index
    %c128_70 = arith.constant 128 : index
    %58 = vector.load %arg6[%c24_69, %c128_70] : memref<240x384xbf16, #tpu.memory_space<vmem>>, vector<192x256xbf16>
    %c48_71 = arith.constant 48 : index
    %c128_72 = arith.constant 128 : index
    %59 = vector.load %arg6[%c48_71, %c128_72] : memref<240x384xbf16, #tpu.memory_space<vmem>>, vector<192x256xbf16>
    %c3 = arith.constant 3 : index
    %c0_73 = arith.constant 0 : index
    %c0_74 = arith.constant 0 : index
    %c0_75 = arith.constant 0 : index
    %60 = vector.load %arg3[%c3, %c0_73, %c0_74, %c0_75] : memref<4x2x256x128xbf16, #tpu.memory_space<vmem>>, vector<1x1x256x128xbf16>
    %61 = vector.shape_cast %60 : vector<1x1x256x128xbf16> to vector<256x128xbf16>
    %cst_76 = arith.constant dense<0.000000e+00> : vector<192x128xf32>
    %62 = tpu.matmul %58, %61, %cst_76 {dimension_numbers = #tpu.dot_dimension_numbers<[1], [0], [0], [1], [0, 0, 1, 1], [], []>} : vector<192x256xbf16>, vector<256x128xbf16>, vector<192x128xf32> -> vector<192x128xf32>
    %c3_77 = arith.constant 3 : index
    %c1_78 = arith.constant 1 : index
    %c0_79 = arith.constant 0 : index
    %c0_80 = arith.constant 0 : index
    %63 = vector.load %arg3[%c3_77, %c1_78, %c0_79, %c0_80] : memref<4x2x256x128xbf16, #tpu.memory_space<vmem>>, vector<1x1x256x128xbf16>
    %64 = vector.shape_cast %63 : vector<1x1x256x128xbf16> to vector<256x128xbf16>
    %cst_81 = arith.constant dense<0.000000e+00> : vector<192x128xf32>
    %65 = tpu.matmul %59, %64, %cst_81 {dimension_numbers = #tpu.dot_dimension_numbers<[1], [0], [0], [1], [0, 0, 1, 1], [], []>} : vector<192x256xbf16>, vector<256x128xbf16>, vector<192x128xf32> -> vector<192x128xf32>
    %66 = arith.addf %62, %65 : vector<192x128xf32>
    %67 = vector.broadcast %9 : vector<1x128xf32> to vector<192x128xf32>
    %68 = arith.addf %66, %67 : vector<192x128xf32>
    %69 = vector.shape_cast %68 : vector<192x128xf32> to vector<8x24x128xf32>
    %70 = vector.extract_strided_slice %69 {offsets = [0, 0, 0], sizes = [8, 16, 128], strides = [1, 1, 1]} : vector<8x24x128xf32> to vector<8x16x128xf32>
    %c0_82 = arith.constant 0 : index
    %c3_83 = arith.constant 3 : index
    %c0_84 = arith.constant 0 : index
    %c0_85 = arith.constant 0 : index
    %c0_86 = arith.constant 0 : index
    %71 = vector.load %arg5[%c0_82, %c3_83, %c0_84, %c0_85, %c0_86] : memref<1x4x8x16x128xf32, #tpu.memory_space<vmem>>, vector<1x1x8x16x128xf32>
    %72 = vector.shape_cast %71 : vector<1x1x8x16x128xf32> to vector<8x16x128xf32>
    %73 = vector.shape_cast %70 : vector<8x16x128xf32> to vector<1x1x8x16x128xf32>
    tpu.vector_store %arg5[%c0_82, %c3_83, %c0_84, %c0_85, %c0_86], %73 {strides = array<i32>} : memref<1x4x8x16x128xf32, #tpu.memory_space<vmem>>, vector<1x1x8x16x128xf32>,
    return
  }
  func.func @transform_0(%arg0: i32, %arg1: i32) -> (i32, i32, i32, i32) {
    %c0_i32 = arith.constant 0 : i32
    %c0_i32_0 = arith.constant 0 : i32
    %c0_i32_1 = arith.constant 0 : i32
    return %arg0, %arg1, %c0_i32, %c0_i32_0 : i32, i32, i32, i32
  }
  func.func @transform_1(%arg0: i32, %arg1: i32) -> (i32, i32, i32, i32) {
    %c0_i32 = arith.constant 0 : i32
    %c0_i32_0 = arith.constant 0 : i32
    %c0_i32_1 = arith.constant 0 : i32
    %c0_i32_2 = arith.constant 0 : i32
    %c0_i32_3 = arith.constant 0 : i32
    return %c0_i32, %c0_i32_0, %c0_i32_1, %c0_i32_2 : i32, i32, i32, i32
  }
  func.func @transform_2(%arg0: i32, %arg1: i32) -> (i32, i32) {
    %c0_i32 = arith.constant 0 : i32
    %c0_i32_0 = arith.constant 0 : i32
    %c0_i32_1 = arith.constant 0 : i32
    return %c0_i32, %c0_i32_0 : i32, i32
  }
  func.func @transform_3(%arg0: i32, %arg1: i32) -> (i32, i32, i32, i32, i32) {
    %c0_i32 = arith.constant 0 : i32
    %c0_i32_0 = arith.constant 0 : i32
    %c0_i32_1 = arith.constant 0 : i32
    %c0_i32_2 = arith.constant 0 : i32
    return %arg0, %c0_i32, %arg1, %c0_i32_0, %c0_i32_1 : i32, i32, i32, i32, i32
  }
}

</mosaic_0001>

<bundles_post_ra>
// kernel: tpu_custom_call.1
= control target key start
LH: loop header
LB: loop body
LE: loop exit
PB: predicated region body
PF: predicated region fallthrough
CT: control target
= control target key end

     0   :  { %s5847_s0 = inlined_call_operand.hbm [shape: bf16[2,2,240,128], index: 0, kind: input, shape index: {}]   ;;  %s5848_s1 = inlined_call_operand.hbm [shape: bf16[4,2,256,128], index: 1, kind: input, shape index: {}]   ;;  %s5849_s2 = inlined_call_operand.vmem [shape: f32[1,128], index: 2, kind: input, shape index: {}]   ;;  %s5850_s3 = inlined_call_operand.hbm [shape: f32[2,4,16,16,128], index: 3, kind: output, shape index: {}]  }
   0x1   :  { %5860 = sst [smem:[#allocation17_spill]] %s5848_s1 }
   0x2   :  { %8 = vsyncpa [#allocation4], 0 }
   0x3   :  { %10 = vsyncpa [#allocation4 + $0x1], 0 }
   0x4   :  { %11 = vsyncpa [#allocation7], 0 }
   0x5   :  { %12 = vsyncpa [#allocation5], 0 }
   0x6   :  { %14 = vsyncpa [#allocation5 + $0x1], 0  ;;  %s5002_s12 = smov 0   ;;  %s5004_s13 = smov 0  }
   0x7   :  { %s5006_s14 = smov 0   ;;  %s5008_s15 = smov 0  }
   0x8   :  { %s5010_s16 = smov 0   ;;  %s5012_s17 = smov 0  }
   0x9   :  { %s5014_s18 = smov 0   ;;  %s5016_s19 = smov 0  }
   0xa LB: > { %5861 = sst [smem:[#allocation14_spill]] %s4961_s17  ;;  %s3603_s20 = sadd.s32 4294967295, %s4969_s19   ;;  %s4969_s19 = sphi %s5016_s19, %s20_s19   ;;  %s4965_s18 = sphi %s5014_s18, %s5887_s18   ;;  %s4961_s17 = sphi %s5012_s17, %s5881_s17   ;;  %s4957_s16 = sphi %s5010_s16, %s5886_s16   ;;  %s4953_s15 = sphi %s5008_s15, %s5880_s15   ;;  %s4949_s14 = sphi %s5006_s14, %s5885_s14   ;;  %s4945_s13 = sphi %s5004_s13, %s5884_s13   ;;  %s4941_s12 = sphi %s5002_s12, %s5883_s12  }
   0xb   : > { %s3604_s21 = sadd.s32 4294967294, %s4969_s19   ;;  %p54_p0 = scmp.ne.s32.totalorder %s4945_s13, %s4941_s12 }
   0xc   : > { %p5046_p1 = scmp.eq.s32.totalorder %s3603_s20, 0  ;;  %p5050_p2 = scmp.eq.s32.totalorder %s3603_s20, 3 }
   0xd   : > { %p128_p3 = scmp.eq.s32.totalorder %s3604_s21, 3  ;;  %p3605_p5 = scmp.ge.s32.totalorder %s4969_s19, 1 }
   0xe   : > { %s5862_s22 = scalar_select %p5046_p1, 1, 0 }
   0xf   : > { %s5863_s23 = scalar_select %p5050_p2, 1, 0 }
  0x10   : > { %p5056_p4 = por %p5046_p1, %p54_p0  ;;  %p5061_p6 = por %p128_p3, %p54_p0 }
  0x11   : > { %p135_p7 = scmp.lt.s32.totalorder %s4969_s19, 5  ;;  %s4971_s27 = smov [#allocation6]  }
  0x12   : > { %s5864_s24 = scalar_select %p5056_p4, 1, 0 }
  0x13   : > { %s5865_s25 = scalar_select %p5061_p6, 1, 0 }
  0x14   : > { %p5066_p8 = pnand %p3605_p5, %p135_p7  ;;  %s147_s28 = sshll.u32 %s4971_s27, 4  ;;  %s148_s28 = int_to_ptr.vmem [resolvable:$true] %s147_s28 }
  0x15   : > { %s5868_s1 = sld [smem:[#allocation17_spill]] }
  0x16   : > { %s5866_s26 = scalar_select %p5066_p8, 1, 0 }
  0x17   : > { %p4564_p9 = pneg %p5066_p8 }
  0x19   : > { %p5074_p10 = pnand %p4564_p9, %p5046_p1 }
  0x1b   : > { %s4837_s5 = scalar_lea.hbm %s5868_s1, 16384  ;;  %p4839_p12 = pneg %p5074_p10 }
  0x1c   : > { %p4838_p11 = scmp.ne.s32.totalorder %s5868_s1, %s4837_s5  ;;  %p4844_p3 = scmp.lt.u32.totalorder %s4837_s5, %s5868_s1 }
  0x1e   : > { %p4840_p13 = pnand %p4839_p12, %p4838_p11 }
  0x20   : > { %p4841_p0 = pneg %p4840_p13 }
  0x22   : > { %p4846_p5 = pnand %p4844_p3, %p4841_p0 }
  0x24   : > { %4849 = shalt.err (!%p4846_p5)
}
  0x25   : > { %s4850_s10 = scalar_lea.vmem %s148_s28, 16384  ;;  %p4858_p1 = scmp.lt.s32.totalorder %s148_s28, %s148_s28 }
  0x26   : > { %p4851_p7 = scmp.ne.s32.totalorder %s148_s28, %s4850_s10  ;;  %p4859_p4 = scmp.lt.s32.totalorder %s4850_s10, %s4850_s10 }
  0x28   : > { %p4853_p9 = pnand %p4851_p7, %p4839_p12  ;;  %p4860_p8 = por %p4859_p4, %p4858_p1 }
  0x2a   : > { %p4854_p6 = pneg %p4853_p9 }
  0x2c   : > { %p4861_p2 = pnand %p4860_p8, %p4854_p6 }
  0x2e   : > { %4864 = shalt.err (!%p4861_p2)
}
  0x2f   : > { %s5855_s11 = smov 64   ;;  %s5856_s20 = smov 4  }
  0x30   : > { %4567 = dma.hbm_to_vmem [thread:$0]  (!%p5074_p10), %s5868_s1, 16384, %s148_s28, [#allocation7], %s5855_s11, %s5855_s11, %s5856_s20  }
  0x31   : > { %s29_s30 = sadd.s32 1, %s4961_s17  ;;  %s32_s4 = sadd.s32 1, %s4965_s18 }
  0x32   : > { %p30_p1 = scmp.ge.s32.totalorder %s29_s30, 2  ;;  %s41_s5 = sadd.s32 1, %s4949_s14 }
  0x33   : > { %p48_p2 = scmp.ne.s32.totalorder %s4949_s14, %s4945_s13  ;;  %p49_p4 = scmp.eq.s32.totalorder %s4969_s19, 0 }
  0x34   : > { %s5889_s30 = smov (%p30_p1, %s29_s30), 0  ;;  %s5891_s4 = smov (!%p30_p1, %s32_s4), %s4965_s18 }
  0x35   : > { %5869 = sst [smem:[#allocation15_spill]] %s5889_s30  ;;  %s37_s29 = ssub.s32 %s4961_s17, %s5889_s30 }
  0x36   : > { %p34_p6 = scmp.ge.s32.totalorder %s5891_s4, 2  ;;  %p5870_p8 = scmp.ne.s32.totalorder %s5863_s23, 0 }
  0x37   : > { %p50_p10 = por %p49_p4, %p48_p2  ;;  %p4577_p12 = scmp.lt.s32.totalorder %s4969_s19, 4 }
  0x38   : > { %p5110_p11 = por %p5870_p8, %p48_p2  ;;  %s5893_s4 = smov (%p34_p6, %s5891_s4), 0 }
  0x39   : > { %5872 = sst [smem:[#allocation16_spill]] %s5893_s4  ;;  %s164_s28 = sand.u32 1, %s4949_s14  }
  0x3a   : > { %s4547_s7 = smul.u32 30, %s4961_s17  ;;  %s36_s8 = ssub.s32 %s4965_s18, %s5893_s4 }
  0x3b   : > { %s38_s9 = sor.u32 %s37_s29, %s36_s8  ;;  %s4546_s10 = smul.u32 120, %s164_s28 }
  0x3c   : > { %p39_p13 = scmp.eq.s32.totalorder %s38_s9, 0  ;;  %s4548_s21 = smul.u32 60, %s4965_s18 }
  0x3d   : > { %p5122_p0 = pnand %p4577_p12, %p50_p10  ;;  %s168_s20 = scalar_lea.vmem [#allocation3], %s4546_s10 }
  0x3e   : > { %s5127_s23 = scalar_select %p39_p13, %s4949_s14, %s41_s5  }
  0x3f   : > { %s174_s11 = sadd.s32 %s4548_s21, %s4547_s7  ;;  %s177_s1 = sshll.u32 %s168_s20, 4  ;;  %s5129_s1 = int_to_ptr.vmem [resolvable:$true] %s177_s1 }
  0x40   : > { %s3608_s30 = sshll.u32 %s174_s11, 6  ;;  %s5136_s8 = scalar_lea.sflag [#allocation4], %s164_s28 }
  0x41   : > { %s5134_s29 = scalar_lea.hbm %s5847_s0, %s3608_s30  ;;  %p4867_p5 = pneg %p5122_p0 }
  0x42   : > { %s4865_s9 = scalar_lea.hbm %s5134_s29, 1920  ;;  %s4870_s17 = scalar_lea.hbm %s5847_s0, 7680 }
  0x43   : > { %p4866_p3 = scmp.ne.s32.totalorder %s5134_s29, %s4865_s9  ;;  %p4871_p1 = scmp.lt.u32.totalorder %s5134_s29, %s5847_s0 }
  0x44   : > { %p4872_p2 = scmp.lt.u32.totalorder %s4870_s17, %s4865_s9  ;;  %p4874_p6 = scmp.lt.u32.totalorder %s4865_s9, %s5134_s29 }
  0x45   : > { %p4868_p7 = pnand %p4867_p5, %p4866_p3 }
  0x46   : > { %p4873_p4 = por %p4872_p2, %p4871_p1 }
  0x47   : > { %p4869_p9 = pneg %p4868_p7 }
  0x48   : > { %p4875_p8 = por %p4874_p6, %p4873_p4 }
  0x4a   : > { %p4876_p10 = pnand %p4875_p8, %p4869_p9 }
  0x4c   : > { %4879 = shalt.err (!%p4876_p10)
}
  0x4d   : > { %s4880_s5 = scalar_lea.vmem %s5129_s1, 1920  ;;  %s4974_s28 = smov [#allocation3]  }
  0x4e   : > { %p4881_p12 = scmp.ne.s32.totalorder %s5129_s1, %s4880_s5  ;;  %s4885_s7 = sshll.u32 %s4974_s28, 4  ;;  %s4886_s7 = int_to_ptr.vmem [resolvable:$false] %s4885_s7 }
  0x4f   : > { %s4887_s10 = scalar_lea.vmem %s4886_s7, 3840  ;;  %p4888_p7 = scmp.lt.s32.totalorder %s5129_s1, %s4886_s7 }
  0x50   : > { %p4883_p13 = pnand %p4881_p12, %p4867_p5  ;;  %p4889_p1 = scmp.lt.s32.totalorder %s4887_s10, %s4880_s5 }
  0x52   : > { %p4884_p3 = pneg %p4883_p13  ;;  %p4890_p2 = por %p4889_p1, %p4888_p7 }
  0x54   : > { %p4891_p4 = pnand %p4890_p2, %p4884_p3 }
  0x56   : > { %4894 = shalt.err (!%p4891_p4)
}
  0x57   : > { %s5874_s21 = smov 4   ;;  %s5875_s9 = smov 64  }
  0x58   : > { %4571 = dma.hbm_to_vmem [thread:$0]  (!%p5122_p0), %s5134_s29, 1920, %s5129_s1, %s5136_s8, %s5875_s9, %s5875_s9, %s5874_s21  }
  0x59   : > { %p5876_p5 = scmp.ne.s32.totalorder %s5866_s26, 0 }
  0x5a   : > { %s5170_s11 = sand.u32 (!%p5876_p5), 1, %s4945_s13   ;;  %p5877_p9 = scmp.ne.s32.totalorder (!%p5876_p5), %s5864_s24, 0 }
  0x5b   : > { %189 = sbr.rel (%p5876_p5) target bundleno = 747 (0x2eb), region = 32  ;;  %s192_s17 = scalar_lea.sflag (!%p5876_p5), [#allocation4], %s5170_s11 }
  0x5c   : > { %s4549_s20 = smul.u32 (!%p5876_p5), 120, %s5170_s11 }
  0x5e   : > { %s5174_s30 = scalar_lea.vmem (!%p5876_p5), [#allocation3], %s4549_s20 }
  0x62   : > { %4928 = dma.done.wait (%p5877_p9), %s192_s17, 1920  }
  0x63   : > { %4930 = vsyncadd (%p5877_p9), %s192_s17, 4294965376  ;;  %p5878_p0 = scmp.ne.s32.totalorder %s5862_s22, 0 }
  0x65   : > { %4932 = dma.done.wait (%p5878_p0), [#allocation7], 16384  }
  0x66   : > { %4934 = vsyncadd (%p5878_p0), [#allocation7], 4294950912  ;;  %v4654_v0 = vld [vmem:[#allocation6 + $0xc0] sm:$0xff]   ;;  %v4658_v4 = vld [vmem:[#allocation6 + $0xc8] sm:$0xff]   ;;  %vm464_vm0 = vsmask.f32 7424 }
  0x67   : > { %v4655_v1 = vld [vmem:[#allocation6 + $0x40] sm:$0xff]   ;;  %3842 = vmatprep.subr.bf16.mxu0 %v4654_v0  ;;  %v4659_v5 = vld [vmem:[#allocation6 + $0x48] sm:$0xff]   ;;  %v4662_v8 = vld [vmem:[#allocation6 + $0xd0] sm:$0xff]   ;;  %vm901_vm1 = vcmask 1043456   ;;  %vm719_vm2 = vcmask 1046528   ;;  %s3611_s1 = sshll.u32 %s5170_s11, 9 }
  0x68   : > { %v4656_v2 = vld [vmem:[#allocation6 + $0x80] sm:$0xff]   ;;  %3930 = vmatprep.subr.bf16.mxu1 %v4655_v1  ;;  %v4660_v6 = vld [vmem:[#allocation6 + $0x88] sm:$0xff]   ;;  %v4663_v9 = vld [vmem:[#allocation6 + $0x50] sm:$0xff]   ;;  %s5571_s26 = scalar_lea.vmem [#allocation8], %s3611_s1  ;;  %s3458_s8 = scalar_lea.sflag [#allocation5], %s5170_s11 }
  0x69   : > { %v4657_v3 = vld [vmem:[#allocation6] sm:$0xff]   ;;  %3843 = vmatpush3.bf16.msra.mxu0 %v4656_v2  ;;  %v4661_v7 = vld [vmem:[#allocation6 + $0x8] sm:$0xff]   ;;  %v4664_v10 = vld [vmem:[#allocation6 + $0x90] sm:$0xff]  }
  0x6a   : > { %3931 = vmatpush3.bf16.msra.mxu1 %v4657_v3  ;;  %3844 = vmatprep.subr.bf16.mxu0 %v4658_v4  ;;  %v4665_v11 = vld [vmem:[#allocation6 + $0x10] sm:$0xff]   ;;  %v4666_v12 = vld [vmem:[#allocation6 + $0xd8] sm:$0xff]   ;;  %v4670_v16 = vld [vmem:[#allocation6 + $0xe0] sm:$0xff]  }
  0x6b   : > { %3932 = vmatprep.subr.bf16.mxu1 %v4659_v5  ;;  %v4667_v13 = vld [vmem:[#allocation6 + $0x58] sm:$0xff]   ;;  %v4671_v17 = vld [vmem:[#allocation6 + $0x60] sm:$0xff]   ;;  %v4674_v20 = vld [vmem:[#allocation6 + $0xe8] sm:$0xff]  }
  0x6c   : > { %v4668_v14 = vld [vmem:[#allocation6 + $0x98] sm:$0xff]   ;;  %v4672_v18 = vld [vmem:[#allocation6 + $0xa0] sm:$0xff]   ;;  %v4675_v21 = vld [vmem:[#allocation6 + $0x68] sm:$0xff]  }
  0x6d   : > { %3845 = vmatpush3.bf16.msra.mxu0 %v4660_v6  ;;  %v4669_v15 = vld [vmem:[#allocation6 + $0x18] sm:$0xff]   ;;  %v4673_v19 = vld [vmem:[#allocation6 + $0x20] sm:$0xff]   ;;  %v4676_v22 = vld [vmem:[#allocation6 + $0xa8] sm:$0xff]  }
  0x6e   : > { %3933 = vmatpush3.bf16.msra.mxu1 %v4661_v7  ;;  %3846 = vmatprep.subr.bf16.mxu0 %v4662_v8  ;;  %v4677_v23 = vld [vmem:[#allocation6 + $0x28] sm:$0xff]   ;;  %v4678_v24 = vld [vmem:[#allocation6 + $0xf0] sm:$0xff]   ;;  %v4682_v28 = vld [vmem:[#allocation6 + $0xf8] sm:$0xff]  }
  0x6f   : > { %3934 = vmatprep.subr.bf16.mxu1 %v4663_v9  ;;  %v4679_v25 = vld [vmem:[#allocation6 + $0x70] sm:$0xff]   ;;  %v4683_v29 = vld [vmem:[#allocation6 + $0x78] sm:$0xff]   ;;  %v4688_v34 = vld [vmem:[%s5174_s30 + $0x18] sm:$0xff]  }
  0x70   : > { %v4680_v26 = vld [vmem:[#allocation6 + $0xb0] sm:$0xff]   ;;  %v4684_v30 = vld [vmem:[#allocation6 + $0xb8] sm:$0xff]   ;;  %v489_v40 = vshll.u32 %v4688_v34, 16  ;;  %v4693_v53 = vld [vmem:[#allocation6 + $0x1c0] sm:$0xff]   ;;  %v493_v58 = vshrl.u32 %v4688_v34, 16 }
  0x71   : > { %3847 = vmatpush3.bf16.msra.mxu0 %v4664_v10  ;;  %v4681_v27 = vld [vmem:[#allocation6 + $0x30] sm:$0xff]   ;;  %v4685_v31 = vld [vmem:[#allocation6 + $0x38] sm:$0xff]   ;;  %v4694_v56 = vld [vmem:[#allocation6 + $0x140] sm:$0xff]  }
  0x72   : > { %3935 = vmatpush3.bf16.msra.mxu1 %v4665_v11  ;;  %3848 = vmatprep.subr.bf16.mxu0 %v4666_v12  ;;  %v4686_v32 = vld [vmem:[%s5174_s30 + $0x8] sm:$0xff]   ;;  %v4687_v33 = vld [vmem:[%s5174_s30 + $0x10] sm:$0xff]   ;;  %v4689_v35 = vld [vmem:[%s5174_s30] sm:$0xff]   ;;  %v491_v46 = vrot.slane %v489_v40, 1 }
  0x73   : > { %3936 = vmatprep.subr.bf16.mxu1 %v4667_v13  ;;  %v473_v36 = vshll.u32 %v4686_v32, 16  ;;  %v477_v37 = vshrl.u32 %v4686_v32, 16  ;;  %v481_v38 = vshll.u32 %v4687_v33, 16  ;;  %v485_v39 = vshrl.u32 %v4687_v33, 16  ;;  %v4690_v43 = vld [vmem:[%s5174_s30 + $0x8] sm:$0xff]   ;;  %v5190_v48 = vld [vmem:[%s5174_s30 + $0x10] sm:$0xff]  }
  0x74   : > { %v466_v41 = vshrl.u32 %v4689_v35, 16  ;;  %v468_v42 = vshll.u32 %v4689_v35, 16  ;;  %345 = vst [vmem:[#allocation2 + $0x18] sm:$0xff] %v4690_v43  ;;  %v4692_v49 = vld [vmem:[%s5174_s30] sm:$0xff]   ;;  %346 = vst [vmem:[#allocation2 + $0x30] sm:$0xff] %v5190_v48  ;;  %v4696_v59 = vld [vmem:[#allocation6 + $0x100] sm:$0xff]   ;;  %v495_v0 = vor.u32 %v493_v58, %v491_v46 }
  0x75   : > { %3849 = vmatpush3.bf16.msra.mxu0 %v4668_v14  ;;  %v475_v44 = vrot.slane %v473_v36, 1  ;;  %v483_v45 = vrot.slane %v481_v38, 1  ;;  %v4697_v60 = vld [vmem:[%s5174_s30 + $0x20] sm:$0xff]   ;;  %v5199_v62 = vld [vmem:[%s5174_s30 + $0x18] sm:$0xff]   ;;  %v903_v63 = vrot.slane %v5190_v48, 4  ;;  %v4703_v12 = vld [vmem:[%s5174_s30 + $0x28] sm:$0xff]  }
  0x76   : > { %3937 = vmatpush3.bf16.msra.mxu1 %v4669_v15  ;;  %3850 = vmatprep.subr.bf16.mxu0 %v4670_v16  ;;  %v470_v47 = vrot.slane %v468_v42, 1  ;;  %v497_v1 = vshll.u32 %v4697_v60, 16  ;;  %v4700_v2 = vld [vmem:[#allocation6 + $0x148] sm:$0xff]   ;;  %347 = vst [vmem:[#allocation2 + $0x48] sm:$0xff] %v5199_v62  ;;  %v4695_v8 = vld [vmem:[#allocation6 + $0x180] sm:$0xff]   ;;  %v501_v15 = vshrl.u32 %v4697_v60, 16 }
  0x77   : > { %3938 = vmatprep.subr.bf16.mxu1 %v4671_v17  ;;  %v479_v50 = vor.u32 %v477_v37, %v475_v44  ;;  %v487_v51 = vor.u32 %v485_v39, %v483_v45  ;;  %v4702_v6 = vld [vmem:[#allocation6 + $0x108] sm:$0xff]   ;;  %v505_v17 = vshll.u32 %v4703_v12, 16  ;;  %v4709_v34 = vld [vmem:[#allocation6 + $0x190] sm:$0xff]   ;;  %v5238_v42 = vld [vmem:[%s5174_s30 + $0x30] sm:$0xff]  }
  0x78   : > { %v471_v52 = vor.u32 %v470_v47, %v466_v41  ;;  %v499_v5 = vrot.slane %v497_v1, 1  ;;  %v4699_v11 = vld [vmem:[#allocation6 + $0x1c8] sm:$0xff]   ;;  %v4710_v35 = vld [vmem:[#allocation6 + $0x110] sm:$0xff]   ;;  %350 = vst [vmem:[#allocation2 + $0x90] sm:$0xff] %v5238_v42  ;;  %v4714_v47 = vld [vmem:[#allocation6 + $0x158] sm:$0xff]  }
  0x79   : > { %3851 = vmatpush3.bf16.msra.mxu0 %v4672_v18  ;;  %v484_v54 = vsel %vm464_vm0, %v479_v50, %v483_v45  ;;  %v492_v55 = vsel %vm464_vm0, %v487_v51, %v491_v46  ;;  %v5211_v18 = vld [vmem:[%s5174_s30 + $0x20] sm:$0xff]   ;;  %v4711_v39 = vld [vmem:[%s5174_s30 + $0x38] sm:$0xff]   ;;  %v4713_v45 = vld [vmem:[#allocation6 + $0x1d8] sm:$0xff]  }
  0x7a   : > { %3939 = vmatpush3.bf16.msra.mxu1 %v4673_v19  ;;  %3852 = vmatprep.subr.bf16.mxu0 %v4674_v20  ;;  %600 = vst [vmem:[#allocation2 + $0x20] sm:$0xff] %v484_v54  ;;  %601 = vst [vmem:[#allocation2 + $0x38] sm:$0xff] %v492_v55  ;;  %v476_v57 = vsel %vm464_vm0, %v471_v52, %v475_v44  ;;  %v5202_v3 = vrot.slane %v492_v55, 4  ;;  %v500_v10 = vsel %vm464_vm0, %v495_v0, %v499_v5  ;;  %v4716_v50 = vld [vmem:[#allocation6 + $0x118] sm:$0xff]   ;;  %v5256_v60 = vld [vmem:[%s5174_s30 + $0x40] sm:$0xff]  }
  0x7b   : > { %3940 = vmatprep.subr.bf16.mxu1 %v4675_v21  ;;  %599 = vst [vmem:[#allocation2 + $0x8] sm:$0xff] %v476_v57  ;;  %1321 = vmatprep.mubr.bf16.mxu1 %v476_v57  ;;  %v804_v61 = vld [vmem:[#allocation2 + $0x18] sm:$0xf0]  ;;  %602 = vst [vmem:[#allocation2 + $0x50] sm:$0xff] %v500_v10  ;;  %v910_v14 = vrot.slane %v500_v10, 4  ;;  %v503_v20 = vor.u32 %v501_v15, %v499_v5  ;;  %v912_v41 = vrot.slane %v5211_v18, 4 }
  0x7c   : > { %v902_v4 = vrot.slane %v804_v61, 4  ;;  %v4705_v21 = vld [vmem:[%s5174_s30 + $0x30] sm:$0xff]   ;;  %348 = vst [vmem:[#allocation2 + $0x60] sm:$0xff] %v5211_v18  ;;  %v521_v44 = vshll.u32 %v4711_v39, 16  ;;  %v525_v51 = vshrl.u32 %v4711_v39, 16  ;;  %v4719_v58 = vld [vmem:[%s5174_s30 + $0x48] sm:$0xff]  }
  0x7d   : > { %3853 = vmatpush3.bf16.msra.mxu0 %v4676_v22  ;;  %v5215_v19 = vsel %vm901_vm1, %v5202_v3, %v910_v14  ;;  %v509_v22 = vshrl.u32 %v4703_v12, 16  ;;  %v517_v36 = vshrl.u32 %v4705_v21, 16  ;;  %352 = vst [vmem:[#allocation2 + $0xc0] sm:$0xff] %v5256_v60  ;;  %v541_v12 = vshrl.u32 %v4719_v58, 16  ;;  %v4735_v39 = vld [vmem:[#allocation6 + $0x1f0] sm:$0xff]  }
  0x7e   : > { %3941 = vmatpush3.bf16.msra.mxu1 %v4677_v23  ;;  %3854 = vmatprep.subr.bf16.mxu0 %v4678_v24  ;;  %v904_v13 = vsel %vm901_vm1, %v902_v4, %v903_v63  ;;  %v908_v23 = vrot.slane %v5199_v62, 4  ;;  %v4701_v24 = vld [vmem:[#allocation6 + $0x188] sm:$0xff]   ;;  %v4722_v4 = vld [vmem:[#allocation6 + $0x160] sm:$0xff]  }
  0x7f   : > { %3942 = vmatprep.subr.bf16.mxu1 %v4679_v25  ;;  %v507_v25 = vrot.slane %v505_v17, 1  ;;  %v4727_v17 = vld [vmem:[#allocation6 + $0x1e8] sm:$0xff]  }
  0x80   : > { %v909_v37 = vsel %vm901_vm1, %v903_v63, %v908_v23  ;;  %v4721_v63 = vld [vmem:[#allocation6 + $0x1e0] sm:$0xff]  }
  0x81   : > { %3855 = vmatpush3.bf16.msra.mxu0 %v4680_v26  ;;  %v805_v7 = vld [vmem:[#allocation2 + $0x20] sm:$0xf0]  ;;  %v5221_v26 = vld [vmem:[%s5174_s30 + $0x28] sm:$0xff]  }
  0x82   : > { %3943 = vmatpush3.bf16.msra.mxu1 %v4681_v27  ;;  %3856 = vmatprep.subr.bf16.mxu0 %v4682_v28  ;;  %v905_v9 = vrot.slane %v805_v7, 4  ;;  %v513_v27 = vshll.u32 %v4705_v21, 16  ;;  %v4708_v28 = vld [vmem:[#allocation6 + $0x150] sm:$0xff]   ;;  %349 = vst [vmem:[#allocation2 + $0x78] sm:$0xff] %v5221_v26  ;;  %v916_v0 = vrot.slane %v5221_v26, 4  ;;  %v4723_v7 = vld [vmem:[#allocation6 + $0x1a0] sm:$0xff]  }
  0x83   : > { %3944 = vmatprep.subr.bf16.mxu1 %v4683_v29  ;;  %v508_v29 = vsel %vm464_vm0, %v503_v20, %v507_v25  ;;  %v4728_v21 = vld [vmem:[#allocation6 + $0x168] sm:$0xff]  }
  0x84   : > { %v907_v16 = vsel %vm901_vm1, %v905_v9, %v5202_v3  ;;  %603 = vst [vmem:[#allocation2 + $0x68] sm:$0xff] %v508_v29  ;;  %v914_v32 = vrot.slane %v508_v29, 4  ;;  %v515_v33 = vrot.slane %v513_v27, 1  ;;  %v4724_v9 = vld [vmem:[#allocation6 + $0x120] sm:$0xff]   ;;  %v920_v27 = vrot.slane %v5238_v42, 4 }
  0x85   : > { %3857 = vmatpush3.bf16.msra.mxu0 %v4684_v30  ;;  %1104 = vmatprep.mubr.bf16.mxu0 %v907_v16  ;;  %v511_v30 = vor.u32 %v509_v22, %v507_v25 }
  0x86   : > { %3945 = vmatpush3.bf16.msra.mxu1 %v4685_v31  ;;  %4018 = vmatprep.subr.bf16.mxu0 %v4693_v53  ;;  %v4707_v31 = vld [vmem:[#allocation6 + $0x1d0] sm:$0xff]   ;;  %v5232_v40 = vsel %vm901_vm1, %v910_v14, %v914_v32  ;;  %v917_v14 = vsel %vm901_vm1, %v912_v41, %v916_v0 }
  0x87   : > { %4106 = vmatprep.subr.bf16.mxu1 %v4694_v56  ;;  %v5228_v38 = vsel %vm464_vm0, %v511_v30, %v515_v33  ;;  %v4717_v53 = vld [vmem:[%s5174_s30 + $0x40] sm:$0xff]   ;;  %v5297_v30 = vld [vmem:[%s5174_s30 + $0x50] sm:$0xff]  }
  0x88   : > { %1105 = vmatmul.mubr.bf16.vlgmr.msra.gmra.mrb[0].mxu0 %v904_v13  ;;  %604 = vst [vmem:[#allocation2 + $0x80] sm:$0xff] %v5228_v38  ;;  %v918_v46 = vrot.slane %v5228_v38, 4  ;;  %v529_v57 = vshll.u32 %v4717_v53, 16  ;;  %v5277_v13 = vld [vmem:[%s5174_s30 + $0x48] sm:$0xff]   ;;  %354 = vst [vmem:[#allocation2 + $0xf0] sm:$0xff] %v5297_v30 }
  0x89   : > { %1322 = vmatmul.mubr.bf16.vlgmr.msra.gmra.mrb[0].mxu1 %v4692_v49  ;;  %4019 = vmatpush3.bf16.msra.mxu0 %v4695_v8  ;;  %v4715_v49 = vld [vmem:[#allocation6 + $0x198] sm:$0xff]   ;;  %353 = vst [vmem:[#allocation2 + $0xd8] sm:$0xff] %v5277_v13 }
  0x8a   : > { %4107 = vmatpush3.bf16.msra.mxu1 %v4696_v59  ;;  %1329 = vmatprep.mubr.bf16.mxu1 %v484_v54  ;;  %v5249_v54 = vld [vmem:[%s5174_s30 + $0x38] sm:$0xff]   ;;  %v533_v59 = vshrl.u32 %v4717_v53, 16  ;;  %v5259_v61 = vsel %vm901_vm1, %v914_v32, %v918_v46  ;;  %v531_v1 = vrot.slane %v529_v57, 1  ;;  %v5324_v53 = vld [vmem:[%s5174_s30 + $0x60] sm:$0xff]   ;;  %v4741_v57 = vld [vmem:[#allocation6 + $0x1f8] sm:$0xff]  }
  0x8b   : > { %4108 = vmatprep.subr.bf16.mxu1 %v4700_v2  ;;  %1112 = vmatprep.mubr.bf16.mxu0 %v5215_v19  ;;  %351 = vst [vmem:[#allocation2 + $0xa8] sm:$0xff] %v5249_v54  ;;  %v537_v2 = vshll.u32 %v4719_v58, 16  ;;  %356 = vst [vmem:[#allocation2 + $0x120] sm:$0xff] %v5324_v53  ;;  %v4742_v58 = vld [vmem:[#allocation6 + $0x178] sm:$0xff]  }
  0x8c   : > { %4020 = vmatprep.subr.bf16.mxu0 %v4699_v11  ;;  %v4725_v11 = vld [vmem:[%s5174_s30 + $0x50] sm:$0xff]  }
  0x8d   : > { %4021 = vmatpush3.bf16.msra.mxu0 %v4701_v24  ;;  %v545_v16 = vshll.u32 %v4725_v11, 16  ;;  %v4730_v24 = vld [vmem:[#allocation6 + $0x128] sm:$0xff]   ;;  %v549_v25 = vshrl.u32 %v4725_v11, 16  ;;  %v4747_v11 = vld [vmem:[%s5174_s30 + $0x8] sm:$0xff]  }
  0x8e   : > { %4109 = vmatpush3.bf16.msra.mxu1 %v4702_v6  ;;  %4022 = vmatprep.subr.bf16.mxu0 %v4707_v31  ;;  %v539_v6 = vrot.slane %v537_v2, 1  ;;  %v4744_v2 = vld [vmem:[#allocation6 + $0x138] sm:$0xff]  }
  0x8f   : > { %4110 = vmatprep.subr.bf16.mxu1 %v4708_v28  ;;  %v547_v22 = vrot.slane %v545_v16, 1  ;;  %v4731_v28 = vld [vmem:[%s5174_s30 + $0x58] sm:$0xff]   ;;  %v721_v16 = vrot.slane %v4747_v11, 1 }
  0x90   : > { %1113 = vmatmul.mubr.bf16.gmra.mrb[4].mxu0 %v909_v37  ;;  %v543_v15 = vor.u32 %v541_v12, %v539_v6  ;;  %v553_v32 = vshll.u32 %v4731_v28, 16  ;;  %v4748_v12 = vld [vmem:[%s5174_s30 + $0x10] sm:$0xff]  }
  0x91   : > { %1330 = vmatmul.mubr.bf16.gmra.mrb[4].mxu1 %v4690_v43  ;;  %v519_v43 = vor.u32 %v517_v36, %v515_v33  ;;  %1119 = vmatprep.mubr.bf16.mxu0 %v5232_v40  ;;  %v551_v31 = vor.u32 %v549_v25, %v547_v22  ;;  %v4733_v33 = vld [vmem:[%s5174_s30 + $0x60] sm:$0xff]  }
  0x92   : > { %1336 = vmatprep.mubr.bf16.mxu1 %v492_v55  ;;  %4111 = vmatpush3.bf16.msra.mxu1 %v4710_v35  ;;  %v913_v55 = vsel %vm901_vm1, %v908_v23, %v912_v41  ;;  %v4729_v23 = vld [vmem:[#allocation6 + $0x1a8] sm:$0xff]   ;;  %v921_v35 = vsel %vm901_vm1, %v916_v0, %v920_v27  ;;  %v555_v36 = vrot.slane %v553_v32, 1  ;;  %v561_v37 = vshll.u32 %v4733_v33, 16 }
  0x93   : > { %4023 = vmatpush3.bf16.msra.mxu0 %v4709_v34  ;;  %4112 = vmatprep.subr.bf16.mxu1 %v4714_v47  ;;  %v557_v34 = vshrl.u32 %v4731_v28, 16  ;;  %v4737_v47 = vld [vmem:[#allocation6 + $0x1b0] sm:$0xff]  }
  0x94   : > { %4024 = vmatprep.subr.bf16.mxu0 %v4713_v45  ;;  %v563_v45 = vrot.slane %v561_v37, 1 }
  0x96   : > { %4113 = vmatpush3.bf16.msra.mxu1 %v4716_v50 }
  0x97   : > { %4025 = vmatpush3.bf16.msra.mxu0 %v4715_v49  ;;  %4114 = vmatprep.subr.bf16.mxu1 %v4722_v4 }
  0x98   : > { %1120 = vmatmul.mubr.bf16.gmra.mrb[8].mxu0 %v913_v55  ;;  %4026 = vmatprep.subr.bf16.mxu0 %v4721_v63 }
  0x99   : > { %1337 = vmatmul.mubr.bf16.gmra.mrb[8].mxu1 %v5190_v48  ;;  %v523_v48 = vrot.slane %v521_v44, 1  ;;  %1126 = vmatprep.mubr.bf16.mxu0 %v5259_v61  ;;  %v559_v44 = vor.u32 %v557_v34, %v555_v36  ;;  %v4755_v34 = vld [vmem:[%s5174_s30 + $0x20] sm:$0xff]  }
  0x9a   : > { %1343 = vmatprep.mubr.bf16.mxu1 %v500_v10  ;;  %4115 = vmatpush3.bf16.msra.mxu1 %v4724_v9 }
  0x9b   : > { %v5244_v52 = vsel %vm464_vm0, %v519_v43, %v523_v48  ;;  %v527_v56 = vor.u32 %v525_v51, %v523_v48  ;;  %4027 = vmatpush3.bf16.msra.mxu0 %v4723_v7  ;;  %4116 = vmatprep.subr.bf16.mxu1 %v4728_v21  ;;  %v5311_v43 = vsel %vm464_vm0, %v551_v31, %v555_v36  ;;  %v924_v48 = vrot.slane %v5249_v54, 4  ;;  %v4739_v51 = vld [vmem:[%s5174_s30 + $0x68] sm:$0xff]   ;;  %v5338_v7 = vld [vmem:[%s5174_s30 + $0x70] sm:$0xff]  }
  0x9c   : > { %605 = vst [vmem:[#allocation2 + $0x98] sm:$0xff] %v5244_v52  ;;  %v922_v8 = vrot.slane %v5244_v52, 4  ;;  %4028 = vmatprep.subr.bf16.mxu0 %v4727_v17  ;;  %609 = vst [vmem:[#allocation2 + $0xf8] sm:$0xff] %v5311_v43  ;;  %v5318_v49 = vsel %vm464_vm0, %v559_v44, %v563_v45  ;;  %v573_v4 = vshrl.u32 %v4739_v51, 16  ;;  %v577_v9 = vshll.u32 %v5338_v7, 16  ;;  %v4751_v17 = vld [vmem:[#allocation6 + $0x2c0] sm:$0xff]  }
  0x9d   : > { %v5267_v5 = vsel %vm464_vm0, %v527_v56, %v531_v1  ;;  %610 = vst [vmem:[#allocation2 + $0x110] sm:$0xff] %v5318_v49  ;;  %v569_v56 = vshll.u32 %v4739_v51, 16  ;;  %v727_v36 = vrot.slane %v4755_v34, 1  ;;  %v936_v44 = vrot.slane %v5297_v30, 4 }
  0x9e   : > { %606 = vst [vmem:[#allocation2 + $0xb0] sm:$0xff] %v5267_v5  ;;  %v5283_v20 = vsel %vm901_vm1, %v918_v46, %v922_v8  ;;  %4117 = vmatpush3.bf16.msra.mxu1 %v4730_v24  ;;  %v4736_v46 = vld [vmem:[#allocation6 + $0x170] sm:$0xff]   ;;  %v4752_v24 = vld [vmem:[#allocation6 + $0x240] sm:$0xff]  }
  0x9f   : > { %4029 = vmatpush3.bf16.msra.mxu0 %v4729_v23  ;;  %4118 = vmatprep.subr.bf16.mxu1 %v4736_v46  ;;  %v571_v0 = vrot.slane %v569_v56, 1  ;;  %v4750_v23 = vld [vmem:[%s5174_s30] sm:$0xfe]   ;;  %v942_v46 = vrot.slane %v5318_v49, 4 }
  0xa0   : > { %1127 = vmatmul.mubr.bf16.gmra.mrb[12].mxu0 %v917_v14  ;;  %4030 = vmatprep.subr.bf16.mxu0 %v4735_v39  ;;  %v5347_v14 = vrot.slane %v577_v9, 1  ;;  %v720_v31 = vrot.slane %v4750_v23, 1  ;;  %v4777_v9 = vld [vmem:[%s5174_s30 + $0x50] sm:$0xff]   ;;  %v4783_v23 = vld [vmem:[%s5174_s30 + $0x60] sm:$0xff]  }
  0xa1   : > { %1344 = vmatmul.mubr.bf16.gmra.mrb[12].mxu1 %v5199_v62  ;;  %v535_v62 = vor.u32 %v533_v59, %v531_v1  ;;  %1134 = vmatprep.mubr.bf16.mxu0 %v5283_v20  ;;  %v925_v59 = vsel %vm901_vm1, %v920_v27, %v924_v48  ;;  %v4743_v1 = vld [vmem:[#allocation6 + $0x1b8] sm:$0xff]   ;;  %v739_v11 = vrot.slane %v4777_v9, 1  ;;  %v4774_v9 = vld [vmem:[#allocation6 + $0x260] sm:$0xff]  }
  0xa2   : > { %1351 = vmatprep.mubr.bf16.mxu1 %v508_v29  ;;  %v926_v29 = vrot.slane %v5267_v5, 4 }
  0xa3   : > { %v5272_v10 = vsel %vm464_vm0, %v535_v62, %v539_v6  ;;  %4031 = vmatpush3.bf16.msra.mxu0 %v4737_v47  ;;  %v928_v62 = vrot.slane %v5256_v60, 4  ;;  %v4761_v47 = vld [vmem:[%s5174_s30 + $0x30] sm:$0xff]  }
  0xa4   : > { %607 = vst [vmem:[#allocation2 + $0xc8] sm:$0xff] %v5272_v10  ;;  %v5306_v41 = vsel %vm901_vm1, %v922_v8, %v926_v29  ;;  %v930_v50 = vrot.slane %v5272_v10, 4  ;;  %4032 = vmatprep.subr.bf16.mxu0 %v4741_v57  ;;  %v575_v8 = vor.u32 %v573_v4, %v571_v0 }
  0xa5   : > { %v929_v21 = vsel %vm901_vm1, %v924_v48, %v928_v62 }
  0xa6   : > { %v5329_v63 = vsel %vm901_vm1, %v926_v29, %v930_v50  ;;  %v580_v27 = vsel %vm464_vm0, %v575_v8, %v5347_v14 }
  0xa7   : > { %4033 = vmatpush3.bf16.msra.mxu0 %v4743_v1  ;;  %612 = vst [vmem:[#allocation2 + $0x140] sm:$0xff] %v580_v27 }
  0xa8   : > { %1135 = vmatmul.mubr.bf16.gmra.mrb[16].mxu0 %v921_v35  ;;  %4194 = vmatprep.subr.bf16.mxu0 %v4751_v17 }
  0xa9   : > { %1352 = vmatmul.mubr.bf16.gmra.mrb[16].mxu1 %v5211_v18  ;;  %v5291_v18 = vsel %vm464_vm0, %v543_v15, %v547_v22  ;;  %1141 = vmatprep.mubr.bf16.mxu0 %v5306_v41  ;;  %v4749_v15 = vld [vmem:[%s5174_s30 + $0x18] sm:$0xff]   ;;  %v723_v22 = vrot.slane %v4748_v12, 1 }
  0xaa   : > { %1358 = vmatprep.mubr.bf16.mxu1 %v5228_v38  ;;  %608 = vst [vmem:[#allocation2 + $0xe0] sm:$0xff] %v5291_v18  ;;  %v5303_v38 = vld [vmem:[%s5174_s30 + $0x58] sm:$0xff]   ;;  %v725_v28 = vrot.slane %v4749_v15, 1 }
  0xab   : > { %355 = vst [vmem:[#allocation2 + $0x108] sm:$0xff] %v5303_v38  ;;  %v5360_v29 = vsel %vm719_vm2, %v721_v16, %v723_v22  ;;  %v940_v56 = vrot.slane %v5303_v38, 4 }
  0xac   : > { %v5363_v32 = vsel %vm719_vm2, %v723_v22, %v725_v28  ;;  %765 = vst [vmem:[#allocation2 + $0x28] sm:$0xff] %v5360_v29  ;;  %v5379_v39 = vsel %vm719_vm2, %v725_v28, %v727_v36 }
  0xad   : > { %766 = vst [vmem:[#allocation2 + $0x40] sm:$0xff] %v5363_v32  ;;  %767 = vst [vmem:[#allocation2 + $0x58] sm:$0xff] %v5379_v39  ;;  %v1574_v22 = vrot.slane %v5363_v32, 4 }
  0xae   : > { %v809_v1 = vld [vmem:[#allocation2 + $0x140] sm:$0xf] }
  0xb0   : > { %1142 = vmatmul.mubr.bf16.gmra.mrb[20].mxu0 %v925_v59  ;;  %v4771_v59 = vld [vmem:[%s5174_s30 + $0x40] sm:$0xff]  }
  0xb1   : > { %1359 = vmatmul.mubr.bf16.gmra.mrb[20].mxu1 %v5221_v26  ;;  %v4738_v26 = vld [vmem:[#allocation6 + $0x130] sm:$0xff]   ;;  %1148 = vmatprep.mubr.bf16.mxu0 %v5329_v63 }
  0xb2   : > { %1365 = vmatprep.mubr.bf16.mxu1 %v5244_v52  ;;  %4119 = vmatpush3.bf16.msra.mxu1 %v4738_v26  ;;  %v565_v52 = vshrl.u32 %v4733_v33, 16  ;;  %v938_v33 = vrot.slane %v5311_v43, 4  ;;  %v731_v26 = vrot.slane %v4761_v47, 1 }
  0xb3   : > { %4120 = vmatprep.subr.bf16.mxu1 %v4742_v58 }
  0xb4   : > { %v567_v55 = vor.u32 %v565_v52, %v563_v45  ;;  %v4760_v45 = vld [vmem:[%s5174_s30 + $0x28] sm:$0xff]   ;;  %v5392_v51 = vsel %vm901_vm1, %v938_v33, %v942_v46 }
  0xb5   : > { %v729_v48 = vrot.slane %v4760_v45, 1  ;;  %v4827_v45 = vld [vmem:[#allocation2 + $0x8] sm:$0xff] }
  0xb6   : > { %v5335_v6 = vsel %vm464_vm0, %v567_v55, %v571_v0  ;;  %4121 = vmatpush3.bf16.msra.mxu1 %v4744_v2  ;;  %v4766_v55 = vld [vmem:[%s5174_s30 + $0x38] sm:$0xff]   ;;  %v941_v0 = vsel %vm901_vm1, %v936_v44, %v940_v56  ;;  %v4772_v2 = vld [vmem:[%s5174_s30 + $0x48] sm:$0xff]  }
  0xb7   : > { %611 = vst [vmem:[#allocation2 + $0x128] sm:$0xff] %v5335_v6  ;;  %4282 = vmatprep.subr.bf16.mxu1 %v4752_v24  ;;  %v5397_v52 = vsel %vm719_vm2, %v729_v48, %v731_v26  ;;  %v733_v57 = vrot.slane %v4766_v55, 1  ;;  %v5405_v58 = vrot.slane %v5335_v6, 4  ;;  %v737_v6 = vrot.slane %v4772_v2, 1 }
  0xb8   : > { %1149 = vmatmul.mubr.bf16.gmra.mrb[24].mxu0 %v929_v21  ;;  %769 = vst [vmem:[#allocation2 + $0x88] sm:$0xff] %v5397_v52  ;;  %v4782_v21 = vld [vmem:[%s5174_s30 + $0x58] sm:$0xff]   ;;  %v1578_v55 = vrot.slane %v5379_v39, 4 }
  0xb9   : > { %1366 = vmatmul.mubr.bf16.gmra.mrb[24].mxu1 %v5238_v42  ;;  %v934_v42 = vrot.slane %v5291_v18, 4  ;;  %v5416_v4 = vsel %vm901_vm1, %v942_v46, %v5405_v58  ;;  %v5436_v17 = vsel %vm719_vm2, %v737_v6, %v739_v11  ;;  %v741_v27 = vrot.slane %v4782_v21, 1  ;;  %v4759_v46 = vld [vmem:[#allocation6 + $0x208] sm:$0xff]   ;;  %v4829_v21 = vld [vmem:[#allocation2 + $0x38] sm:$0xff] }
  0xba   : > { %1373 = vmatprep.mubr.bf16.mxu1 %v5267_v5  ;;  %v4746_v5 = vld [vmem:[%s5174_s30 + $0x68] sm:$0xff]   ;;  %773 = vst [vmem:[#allocation2 + $0xe8] sm:$0xff] %v5436_v17  ;;  %v1579_v2 = vsel %vm901_vm1, %v1574_v22, %v1578_v55 }
  0xbb   : > { %357 = vst [vmem:[#allocation2 + $0x138] sm:$0xff] %v4746_v5  ;;  %v5353_v25 = vsel %vm901_vm1, %v930_v50, %v934_v42  ;;  %v5374_v37 = vsel %vm901_vm1, %v934_v42, %v938_v33  ;;  %v5389_v50 = vsel %vm719_vm2, %v727_v36, %v729_v48  ;;  %v944_v5 = vrot.slane %v5324_v53, 4  ;;  %v1473_v53 = vld [vmem:[#allocation2 + $0x28] sm:$0xf0]  ;;  %v4757_v33 = vld [vmem:[#allocation6 + $0x248] sm:$0xff]  }
  0xbc   : > { %1156 = vmatprep.mubr.bf16.mxu0 %v5353_v25  ;;  %768 = vst [vmem:[#allocation2 + $0x70] sm:$0xff] %v5389_v50  ;;  %v1573_v28 = vrot.slane %v1473_v53, 4  ;;  %v4763_v48 = vld [vmem:[#allocation6 + $0x250] sm:$0xff]  }
  0xbd   : > { %v945_v12 = vsel %vm901_vm1, %v940_v56, %v944_v5  ;;  %v4793_v56 = vld [vmem:[%s5174_s30 + $0x70] sm:$0xff]   ;;  %v4764_v53 = vld [vmem:[#allocation6 + $0x290] sm:$0xff]  }
  0xbe   : > { %v1575_v36 = vsel %vm901_vm1, %v1573_v28, %v1574_v22  ;;  %v4767_v22 = vld [vmem:[#allocation6 + $0x2d8] sm:$0xff]   ;;  %v1586_v28 = vrot.slane %v5397_v52, 4 }
  0xc1   : > { %1374 = vmatmul.mubr.bf16.gmra.mrb[28].mxu1 %v5249_v54  ;;  %v932_v54 = vrot.slane %v5277_v13, 4 }
  0xc2   : > { %1380 = vmatprep.mubr.bf16.mxu1 %v5272_v10  ;;  %v722_v10 = vsel %vm719_vm2, %v720_v31, %v721_v16  ;;  %v808_v15 = vld [vmem:[#allocation2 + $0x138] sm:$0xf]  ;;  %v743_v31 = vrot.slane %v4783_v23, 1  ;;  %v4781_v23 = vld [vmem:[#allocation6 + $0x228] sm:$0xff]  }
  0xc3   : > { %v933_v35 = vsel %vm901_vm1, %v928_v62, %v932_v54  ;;  %v735_v62 = vrot.slane %v4771_v59, 1  ;;  %v948_v24 = vrot.slane %v808_v15, 4  ;;  %v4768_v59 = vld [vmem:[#allocation6 + $0x258] sm:$0xff]   ;;  %v4776_v15 = vld [vmem:[#allocation6 + $0x220] sm:$0xff]  }
  0xc4   : > { %1157 = vmatmul.mubr.bf16.gmra.mrb[28].mxu0 %v933_v35  ;;  %v4788_v35 = vld [vmem:[%s5174_s30 + $0x68] sm:$0xff]  }
  0xc5   : > { %1163 = vmatprep.mubr.bf16.mxu0 %v5374_v37  ;;  %v5421_v42 = vsel %vm719_vm2, %v733_v57, %v735_v62  ;;  %v5427_v8 = vsel %vm719_vm2, %v735_v62, %v737_v6  ;;  %v949_v34 = vsel %vm901_vm1, %v944_v5, %v948_v24  ;;  %v745_v47 = vrot.slane %v4788_v35, 1  ;;  %v4828_v62 = vld [vmem:[#allocation2 + $0x20] sm:$0xff]  ;;  %v4769_v24 = vld [vmem:[#allocation6 + $0x298] sm:$0xff]  }
  0xc6   : > { %771 = vst [vmem:[#allocation2 + $0xb8] sm:$0xff] %v5421_v42  ;;  %772 = vst [vmem:[#allocation2 + $0xd0] sm:$0xff] %v5427_v8  ;;  %v4756_v6 = vld [vmem:[#allocation6 + $0x2c8] sm:$0xff]   ;;  %v4830_v35 = vld [vmem:[#allocation2 + $0x50] sm:$0xff] }
  0xc9   : > { %1381 = vmatmul.mubr.bf16.gmra.mrb[32].mxu1 %v5256_v60  ;;  %v937_v60 = vsel %vm901_vm1, %v932_v54, %v936_v44  ;;  %v4754_v54 = vld [vmem:[#allocation6 + $0x200] sm:$0xff]   ;;  %v1472_v44 = vld [vmem:[#allocation2 + $0x20] sm:$0xf0] }
  0xca   : > { %1387 = vmatprep.mubr.bf16.mxu1 %v5291_v18 }
  0xcc   : > { %1164 = vmatmul.mubr.bf16.gmra.mrb[32].mxu0 %v937_v60  ;;  %v5455_v60 = vsel %vm719_vm2, %v743_v31, %v745_v47 }
  0xcd   : > { %1170 = vmatprep.mubr.bf16.mxu0 %v5392_v51  ;;  %776 = vst [vmem:[#allocation2 + $0x130] sm:$0xff] %v5455_v60 }
  0xd1   : > { %1388 = vmatmul.mubr.bf16.gmra.mrb[36].mxu1 %v5277_v13  ;;  %v5408_v13 = vsel %vm719_vm2, %v731_v26, %v733_v57  ;;  %v1570_v26 = vrot.slane %v1472_v44, 4  ;;  %v4765_v57 = vld [vmem:[#allocation6 + $0x210] sm:$0xff]   ;;  %v4795_v44 = vld [vmem:[#allocation6 + $0x340] sm:$0xff]  }
  0xd2   : > { %1395 = vmatprep.mubr.bf16.mxu1 %v5311_v43  ;;  %770 = vst [vmem:[#allocation2 + $0xa0] sm:$0xff] %v5408_v13 }
  0xd4   : > { %1171 = vmatmul.mubr.bf16.gmra.mrb[36].mxu0 %v941_v0  ;;  %v1572_v0 = vsel %vm901_vm1, %v1570_v26, %v5202_v3  ;;  %v4758_v3 = vld [vmem:[#allocation6 + $0x288] sm:$0xff]  }
  0xd5   : > { %1178 = vmatprep.mubr.bf16.mxu0 %v5416_v4 }
  0xd9   : > { %1396 = vmatmul.mubr.bf16.gmra.mrb[40].mxu1 %v5297_v30  ;;  %v950_v30 = vrot.slane %v809_v1, 4  ;;  %v4753_v1 = vld [vmem:[#allocation6 + $0x280] sm:$0xff]  }
  0xda   : > { %1402 = vmatprep.mubr.bf16.mxu1 %v5318_v49 }
  0xdb   : > { %v951_v16 = vsel %vm901_vm1, %v5405_v58, %v950_v30  ;;  %v4770_v30 = vld [vmem:[#allocation6 + $0x218] sm:$0xff]  }
  0xdc   : > { %1179 = vmatmul.mubr.bf16.gmra.mrb[40].mxu0 %v945_v12  ;;  %v4762_v12 = vld [vmem:[#allocation6 + $0x2d0] sm:$0xff]  }
  0xdd   : > { %1185 = vmatprep.mubr.bf16.mxu0 %v951_v16  ;;  %v4779_v16 = vld [vmem:[#allocation6 + $0x268] sm:$0xff]  }
  0xe1   : > { %1403 = vmatmul.mubr.bf16.gmra.mrb[44].mxu1 %v5303_v38  ;;  %v5443_v38 = vsel %vm719_vm2, %v739_v11, %v741_v27  ;;  %v1582_v11 = vrot.slane %v5389_v50, 4 }
  0xe2   : > { %1989 = vmatprep.mubr.bf16.mxu1 %v722_v10  ;;  %774 = vst [vmem:[#allocation2 + $0x100] sm:$0xff] %v5443_v38  ;;  %v5447_v10 = vsel %vm719_vm2, %v741_v27, %v743_v31  ;;  %v4785_v27 = vld [vmem:[#allocation6 + $0x270] sm:$0xff]   ;;  %v4773_v31 = vld [vmem:[#allocation6 + $0x2e0] sm:$0xff]  }
  0xe3   : > { %775 = vst [vmem:[#allocation2 + $0x118] sm:$0xff] %v5447_v10 }
  0xe4   : > { %1186 = vmatmul.mubr.bf16.gmra.mrb[44].mxu0 %v949_v34  ;;  %v4775_v34 = vld [vmem:[#allocation6 + $0x2a0] sm:$0xff]  }
  0xe5   : > { %1772 = vmatprep.mubr.bf16.mxu0 %v1575_v36  ;;  %v4792_v36 = vld [vmem:[#allocation6 + $0x238] sm:$0xff]  }
  0xe9   : > { %1990 = vmatmul.mubr.bf16.vlgmr.msra.gmra.mrb[48].mxu1 %v4827_v45  ;;  %v4780_v45 = vld [vmem:[#allocation6 + $0x2a8] sm:$0xff]  }
  0xea   : > { %4283 = vmatpush3.bf16.msra.mxu1 %v4754_v54  ;;  %1997 = vmatprep.mubr.bf16.mxu1 %v5360_v29  ;;  %v747_v29 = vrot.slane %v4793_v56, 1  ;;  %v4787_v54 = vld [vmem:[#allocation6 + $0x230] sm:$0xff]   ;;  %v4791_v56 = vld [vmem:[#allocation6 + $0x2b8] sm:$0xff]  }
  0xeb   : > { %4284 = vmatprep.subr.bf16.mxu1 %v4757_v33  ;;  %v4790_v33 = vld [vmem:[#allocation6 + $0x278] sm:$0xff]  }
  0xec   : > { %v748_v5 = vsel %vm719_vm2, %v745_v47, %v747_v29  ;;  %778 = vst [vmem:[#allocation2 + $0x160] sm:$0x7f] %v747_v29  ;;  %1773 = vmatmul.mubr.bf16.vlgmr.msra.gmra.mrb[48].mxu0 %v1572_v0  ;;  %v4784_v47 = vld [vmem:[#allocation6 + $0x2f0] sm:$0xff]   ;;  %v4832_v29 = vld [vmem:[#allocation2 + $0x80] sm:$0xff]  ;;  %v4833_v0 = vld [vmem:[#allocation2 + $0x98] sm:$0xff] }
  0xed   : > { %777 = vst [vmem:[#allocation2 + $0x148] sm:$0xff] %v748_v5  ;;  %4195 = vmatpush3.bf16.msra.mxu0 %v4753_v1  ;;  %1780 = vmatprep.mubr.bf16.mxu0 %v1579_v2  ;;  %v1602_v1 = vrot.slane %v5436_v17, 4  ;;  %v581_v2 = vshrl.u32 %v5338_v7, 16  ;;  %v4835_v5 = vld [vmem:[#allocation2 + $0xc8] sm:$0xff]  ;;  %v1610_v7 = vrot.slane %v5447_v10, 4 }
  0xee   : > { %4285 = vmatpush3.bf16.msra.mxu1 %v4759_v46  ;;  %4196 = vmatprep.subr.bf16.mxu0 %v4756_v6  ;;  %v1590_v46 = vrot.slane %v5408_v13, 4  ;;  %v4826_v6 = vld [vmem:[%s5174_s30 + $0x70] sm:$0x7f]  }
  0xef   : > { %4286 = vmatprep.subr.bf16.mxu1 %v4763_v48  ;;  %v4786_v48 = vld [vmem:[#allocation6 + $0x2b0] sm:$0xff]   ;;  %358 = vst [vmem:[#allocation2 + $0x150] sm:$0x7f] %v4826_v6  ;;  %v4810_v6 = vld [vmem:[#allocation6 + $0x3e0] sm:$0xff]  }
  0xf0   : > { %v1591_v26 = vsel %vm901_vm1, %v1586_v28, %v1590_v46 }
  0xf1   : > { %1998 = vmatmul.mubr.bf16.gmra.mrb[52].mxu1 %v4828_v62  ;;  %4197 = vmatpush3.bf16.msra.mxu0 %v4758_v3  ;;  %v4834_v62 = vld [vmem:[#allocation2 + $0xb0] sm:$0xff] }
  0xf2   : > { %2004 = vmatprep.mubr.bf16.mxu1 %v5363_v32  ;;  %4287 = vmatpush3.bf16.msra.mxu1 %v4765_v57  ;;  %v1583_v32 = vsel %vm901_vm1, %v1578_v55, %v1582_v11  ;;  %v4789_v55 = vld [vmem:[#allocation6 + $0x2f8] sm:$0xff]   ;;  %v4794_v57 = vld [vmem:[#allocation6 + $0x3c0] sm:$0xff]  }
  0xf3   : > { %4288 = vmatprep.subr.bf16.mxu1 %v4768_v59  ;;  %4198 = vmatprep.subr.bf16.mxu0 %v4762_v12  ;;  %v2113_v3 = vld [vmem:[#allocation2 + $0x30] sm:$0xff]  ;;  %v1476_v12 = vld [vmem:[#allocation2 + $0x140] sm:$0xf] }
  0xf4   : > { %1781 = vmatmul.mubr.bf16.gmra.mrb[52].mxu0 %v5215_v19  ;;  %v4778_v19 = vld [vmem:[#allocation6 + $0x2e8] sm:$0xff]  }
  0xf5   : > { %1787 = vmatprep.mubr.bf16.mxu0 %v1583_v32  ;;  %4199 = vmatpush3.bf16.msra.mxu0 %v4764_v53  ;;  %v4797_v32 = vld [vmem:[#allocation6 + $0x300] sm:$0xff]  }
  0xf6   : > { %4289 = vmatpush3.bf16.msra.mxu1 %v4770_v30  ;;  %4200 = vmatprep.subr.bf16.mxu0 %v4767_v22  ;;  %v2114_v30 = vld [vmem:[#allocation2 + $0x38] sm:$0xff]  ;;  %v4799_v22 = vld [vmem:[#allocation6 + $0x348] sm:$0xff]  }
  0xf7   : > { %4290 = vmatprep.subr.bf16.mxu1 %v4774_v9 }
  0xf9   : > { %2005 = vmatmul.mubr.bf16.gmra.mrb[56].mxu1 %v4829_v21  ;;  %4201 = vmatpush3.bf16.msra.mxu0 %v4769_v24  ;;  %v5523_v24 = vld [vmem:[#allocation2 + $0x68] sm:$0xff] }
  0xfa   : > { %2011 = vmatprep.mubr.bf16.mxu1 %v5379_v39  ;;  %4291 = vmatpush3.bf16.msra.mxu1 %v4776_v15  ;;  %v1587_v39 = vsel %vm901_vm1, %v1582_v11, %v1586_v28  ;;  %v2462_v28 = vrot.slane %v5523_v24, 4 }
  0xfb   : > { %4292 = vmatprep.subr.bf16.mxu1 %v4779_v16  ;;  %4202 = vmatprep.subr.bf16.mxu0 %v4773_v31  ;;  %v1616_v16 = vrot.slane %v1476_v12, 4  ;;  %v4803_v31 = vld [vmem:[#allocation6 + $0x350] sm:$0xff]   ;;  %v4816_v12 = vld [vmem:[#allocation6 + $0x3a8] sm:$0xff]  }
  0xfc   : > { %1788 = vmatmul.mubr.bf16.gmra.mrb[56].mxu0 %v5232_v40  ;;  %v1594_v40 = vrot.slane %v5421_v42, 4 }
  0xfd   : > { %1794 = vmatprep.mubr.bf16.mxu0 %v1587_v39  ;;  %4203 = vmatpush3.bf16.msra.mxu0 %v4775_v34  ;;  %v4807_v34 = vld [vmem:[#allocation6 + $0x358] sm:$0xff]   ;;  %v4796_v39 = vld [vmem:[#allocation6 + $0x380] sm:$0xff]  }
  0xfe   : > { %4293 = vmatpush3.bf16.msra.mxu1 %v4781_v23  ;;  %4204 = vmatprep.subr.bf16.mxu0 %v4778_v19  ;;  %v1595_v59 = vsel %vm901_vm1, %v1590_v46, %v1594_v40  ;;  %v2115_v23 = vld [vmem:[#allocation2 + $0x48] sm:$0xff]  ;;  %v4798_v19 = vld [vmem:[#allocation6 + $0x3c8] sm:$0xff]  }
  0xff   : > { %4294 = vmatprep.subr.bf16.mxu1 %v4785_v27  ;;  %v4801_v27 = vld [vmem:[#allocation6 + $0x308] sm:$0xff]  }
 0x101   : > { %2012 = vmatmul.mubr.bf16.gmra.mrb[60].mxu1 %v4830_v35  ;;  %4205 = vmatpush3.bf16.msra.mxu0 %v4780_v45  ;;  %v2117_v35 = vld [vmem:[#allocation2 + $0x60] sm:$0xff]  ;;  %v4809_v45 = vld [vmem:[#allocation6 + $0x318] sm:$0xff]  }
 0x102   : > { %2019 = vmatprep.mubr.bf16.mxu1 %v5389_v50  ;;  %4295 = vmatpush3.bf16.msra.mxu1 %v4787_v54  ;;  %v4831_v50 = vld [vmem:[#allocation2 + $0x68] sm:$0xff] }
 0x103   : > { %4296 = vmatprep.subr.bf16.mxu1 %v4790_v33  ;;  %4206 = vmatprep.subr.bf16.mxu0 %v4784_v47  ;;  %v4811_v47 = vld [vmem:[#allocation6 + $0x360] sm:$0xff]  }
 0x104   : > { %1795 = vmatmul.mubr.bf16.gmra.mrb[60].mxu0 %v5259_v61 }
 0x105   : > { %1802 = vmatprep.mubr.bf16.mxu0 %v1591_v26  ;;  %4207 = vmatpush3.bf16.msra.mxu0 %v4786_v48  ;;  %v4800_v48 = vld [vmem:[#allocation6 + $0x388] sm:$0xff]   ;;  %v4802_v26 = vld [vmem:[#allocation6 + $0x3d0] sm:$0xff]  }
 0x106   : > { %4297 = vmatpush3.bf16.msra.mxu1 %v4792_v36  ;;  %4208 = vmatprep.subr.bf16.mxu0 %v4789_v55  ;;  %v2460_v36 = vrot.slane %v2117_v35, 4  ;;  %v4813_v55 = vld [vmem:[#allocation6 + $0x320] sm:$0xff]  }
 0x107   : > { %4458 = vmatprep.subr.bf16.mxu1 %v4795_v44  ;;  %v5532_v44 = vld [vmem:[#allocation2 + $0x80] sm:$0xff] }
 0x108   : > { %v2466_v46 = vrot.slane %v5532_v44, 4 }
 0x109   : > { %2020 = vmatmul.mubr.bf16.gmra.mrb[64].mxu1 %v4831_v50  ;;  %4209 = vmatpush3.bf16.msra.mxu0 %v4791_v56  ;;  %v4815_v56 = vld [vmem:[#allocation6 + $0x368] sm:$0xff]  }
 0x10a   : > { %2026 = vmatprep.mubr.bf16.mxu1 %v5397_v52  ;;  %4370 = vmatprep.subr.bf16.mxu0 %v4794_v57  ;;  %v1598_v52 = vrot.slane %v5427_v8, 4  ;;  %v4804_v57 = vld [vmem:[#allocation6 + $0x390] sm:$0xff]  }
 0x10c   : > { %1803 = vmatmul.mubr.bf16.gmra.mrb[64].mxu0 %v5283_v20  ;;  %v1599_v61 = vsel %vm901_vm1, %v1594_v40, %v1598_v52  ;;  %v1603_v20 = vsel %vm901_vm1, %v1598_v52, %v1602_v1  ;;  %v5539_v40 = vsel %vm901_vm1, %v2462_v28, %v2466_v46 }
 0x10d   : > { %1809 = vmatprep.mubr.bf16.mxu0 %v1595_v59  ;;  %v2119_v59 = vld [vmem:[#allocation2 + $0x78] sm:$0xff] }
 0x10e   : > { %v2464_v52 = vrot.slane %v2119_v59, 4 }
 0x111   : > { %2027 = vmatmul.mubr.bf16.gmra.mrb[68].mxu1 %v4832_v29  ;;  %v4806_v29 = vld [vmem:[#allocation6 + $0x3d8] sm:$0xff]  }
 0x112   : > { %2033 = vmatprep.mubr.bf16.mxu1 %v5408_v13  ;;  %v583_v13 = vor.u32 %v581_v2, %v5347_v14  ;;  %v4819_v2 = vld [vmem:[#allocation6 + $0x370] sm:$0xff]  }
 0x114   : > { %1810 = vmatmul.mubr.bf16.gmra.mrb[68].mxu0 %v5306_v41  ;;  %613 = vst [vmem:[#allocation2 + $0x158] sm:$0x7f] %v583_v13  ;;  %v1606_v41 = vrot.slane %v5443_v38, 4 }
 0x115   : > { %1816 = vmatprep.mubr.bf16.mxu0 %v1599_v61  ;;  %v5541_v61 = vld [vmem:[#allocation2 + $0x98] sm:$0xff] }
 0x116   : > { %v1611_v14 = vsel %vm901_vm1, %v1606_v41, %v1610_v7 }
 0x119   : > { %2034 = vmatmul.mubr.bf16.gmra.mrb[72].mxu1 %v4833_v0  ;;  %v4817_v0 = vld [vmem:[#allocation6 + $0x328] sm:$0xff]  }
 0x11a   : > { %2041 = vmatprep.mubr.bf16.mxu1 %v5421_v42  ;;  %v1607_v42 = vsel %vm901_vm1, %v1602_v1, %v1606_v41  ;;  %v2470_v1 = vrot.slane %v5541_v61, 4 }
 0x11c   : > { %1817 = vmatmul.mubr.bf16.gmra.mrb[72].mxu0 %v5329_v63  ;;  %v1614_v63 = vrot.slane %v5455_v60, 4  ;;  %v2111_v60 = vld [vmem:[#allocation2 + $0x18] sm:$0xf0] }
 0x11d   : > { %1824 = vmatprep.mubr.bf16.mxu0 %v1603_v20  ;;  %v4808_v20 = vld [vmem:[#allocation6 + $0x398] sm:$0xff]  }
 0x121   : > { %2042 = vmatmul.mubr.bf16.gmra.mrb[76].mxu1 %v4834_v62 }
 0x122   : > { %2048 = vmatprep.mubr.bf16.mxu1 %v5427_v8  ;;  %v2112_v8 = vld [vmem:[#allocation2 + $0x20] sm:$0xf0] }
 0x123   : > { %v2453_v9 = vrot.slane %v2112_v8, 4  ;;  %v4823_v8 = vld [vmem:[#allocation6 + $0x378] sm:$0xff]  }
 0x124   : > { %1825 = vmatmul.mubr.bf16.gmra.mrb[76].mxu0 %v5353_v25  ;;  %v1477_v25 = vld [vmem:[#allocation2 + $0x148] sm:$0xf] }
 0x125   : > { %1831 = vmatprep.mubr.bf16.mxu0 %v1607_v42 }
 0x129   : > { %2049 = vmatmul.mubr.bf16.gmra.mrb[80].mxu1 %v4835_v5  ;;  %v2465_v5 = vsel %vm901_vm1, %v2460_v36, %v2464_v52 }
 0x12a   : > { %2055 = vmatprep.mubr.bf16.mxu1 %v5436_v17  ;;  %v1615_v17 = vsel %vm901_vm1, %v1610_v7, %v1614_v63  ;;  %v4821_v7 = vld [vmem:[#allocation6 + $0x330] sm:$0xff]  }
 0x12c   : > { %1832 = vmatmul.mubr.bf16.gmra.mrb[80].mxu0 %v5374_v37 }
 0x12d   : > { %1838 = vmatprep.mubr.bf16.mxu0 %v1611_v14 }
 0x131   : > { %2056 = vmatmul.mubr.bf16.gmra.mrb[84].mxu1 %v5291_v18  ;;  %v5506_v18 = vrot.slane %v2114_v30, 4 }
 0x132   : > { %2063 = vmatprep.mubr.bf16.mxu1 %v5443_v38  ;;  %v1618_v38 = vrot.slane %v1477_v25, 4  ;;  %v2121_v25 = vld [vmem:[#allocation2 + $0x90] sm:$0xff] }
 0x133   : > { %v2455_v37 = vsel %vm901_vm1, %v2453_v9, %v5506_v18  ;;  %v4814_v9 = vld [vmem:[#allocation6 + $0x3e8] sm:$0xff]  }
 0x134   : > { %1839 = vmatmul.mubr.bf16.gmra.mrb[84].mxu0 %v5392_v51  ;;  %v1619_v11 = vsel %vm901_vm1, %v1614_v63, %v1618_v38  ;;  %v2451_v51 = vrot.slane %v2113_v3, 4  ;;  %v5548_v63 = vsel %vm901_vm1, %v2466_v46, %v2470_v1  ;;  %v2468_v38 = vrot.slane %v2121_v25, 4 }
 0x135   : > { %1846 = vmatprep.mubr.bf16.mxu0 %v1615_v17  ;;  %v4812_v17 = vld [vmem:[#allocation6 + $0x3a0] sm:$0xff]  }
 0x139   : > { %2064 = vmatmul.mubr.bf16.gmra.mrb[88].mxu1 %v5311_v43  ;;  %v5512_v43 = vld [vmem:[#allocation2 + $0x50] sm:$0xff] }
 0x13a   : > { %2070 = vmatprep.mubr.bf16.mxu1 %v5447_v10  ;;  %v2450_v10 = vrot.slane %v2111_v60, 4  ;;  %v2458_v15 = vrot.slane %v5512_v43, 4  ;;  %v4825_v60 = vld [vmem:[#allocation6 + $0x338] sm:$0xff]  }
 0x13c   : > { %1847 = vmatmul.mubr.bf16.gmra.mrb[88].mxu0 %v5416_v4  ;;  %v2452_v53 = vsel %vm901_vm1, %v2450_v10, %v2451_v51  ;;  %v5519_v21 = vsel %vm901_vm1, %v5506_v18, %v2458_v15  ;;  %v2456_v4 = vrot.slane %v2115_v23, 4  ;;  %v5530_v33 = vsel %vm901_vm1, %v2458_v15, %v2462_v28  ;;  %v4820_v28 = vld [vmem:[#allocation6 + $0x3b0] sm:$0xff]  }
 0x13d   : > { %1853 = vmatprep.mubr.bf16.mxu0 %v1619_v11 }
 0x13e   : > { %v2457_v54 = vsel %vm901_vm1, %v2451_v51, %v2456_v4  ;;  %v2461_v50 = vsel %vm901_vm1, %v2456_v4, %v2460_v36  ;;  %v4818_v51 = vld [vmem:[#allocation6 + $0x3f0] sm:$0xff]  }
 0x13f   : > { %v5565_v36 = vld [vmem:[#allocation2 + $0xc8] sm:$0xff] }
 0x141   : > { %2071 = vmatmul.mubr.bf16.gmra.mrb[92].mxu1 %v5318_v49  ;;  %v1617_v49 = vsel %vm901_vm1, %v5405_v58, %v1616_v16  ;;  %v4805_v58 = vld [vmem:[#allocation6 + $0x310] sm:$0xff]  }
 0x142   : > { %2652 = vmatprep.mubr.bf16.mxu1 %v2455_v37  ;;  %v5550_v37 = vld [vmem:[#allocation2 + $0xb0] sm:$0xff] }
 0x143   : > { %v2474_v3 = vrot.slane %v5550_v37, 4 }
 0x144   : > { %1854 = vmatmul.mubr.bf16.gmra.mrb[92].mxu0 %v1617_v49 }
 0x145   : > { %2335 = vmatprep.mubr.bf16.mxu0 %v5512_v43  ;;  %v5557_v49 = vsel %vm901_vm1, %v2470_v1, %v2474_v3 }
 0x149   : > { %2653 = vmatmul.mubr.bf16.vlgmr.msra.gmra.mrb[96].mxu1 %v2452_v53  ;;  %v2469_v53 = vsel %vm901_vm1, %v2464_v52, %v2468_v38 }
 0x14a   : > { %4459 = vmatpush3.bf16.msra.mxu1 %v4797_v32  ;;  %2660 = vmatprep.mubr.bf16.mxu1 %v5519_v21 }
 0x14b   : > { %4460 = vmatprep.subr.bf16.mxu1 %v4799_v22 }
 0x14c   : > { %2336 = vmatmul.mubr.bf16.vlgmr.msra.gmra.mrb[96].mxu0 %v2115_v23 }
 0x14d   : > { %4371 = vmatpush3.bf16.msra.mxu0 %v4796_v39  ;;  %2343 = vmatprep.mubr.bf16.mxu0 %v5523_v24 }
 0x14e   : > { %4461 = vmatpush3.bf16.msra.mxu1 %v4801_v27  ;;  %4372 = vmatprep.subr.bf16.mxu0 %v4798_v19 }
 0x14f   : > { %4462 = vmatprep.subr.bf16.mxu1 %v4803_v31  ;;  %v5563_v31 = vld [vmem:[%s5849_s2] ss:$0 sm:$0xff] }
 0x151   : > { %2661 = vmatmul.mubr.bf16.gmra.mrb[100].mxu1 %v2457_v54  ;;  %4373 = vmatpush3.bf16.msra.mxu0 %v4800_v48 }
 0x152   : > { %2667 = vmatprep.mubr.bf16.mxu1 %v5530_v33  ;;  %4463 = vmatpush3.bf16.msra.mxu1 %v4805_v58  ;;  %v2123_v58 = vld [vmem:[#allocation2 + $0xa8] sm:$0xff] }
 0x153   : > { %4464 = vmatprep.subr.bf16.mxu1 %v4807_v34  ;;  %4374 = vmatprep.subr.bf16.mxu0 %v4802_v26  ;;  %v4822_v34 = vld [vmem:[#allocation6 + $0x3f8] sm:$0xff]   ;;  %v2472_v19 = vrot.slane %v2123_v58, 4 }
 0x154   : > { %2344 = vmatmul.mubr.bf16.gmra.mrb[100].mxu0 %v2117_v35  ;;  %v4824_v26 = vld [vmem:[#allocation6 + $0x3b8] sm:$0xff]  }
 0x155   : > { %2350 = vmatprep.mubr.bf16.mxu0 %v5532_v44  ;;  %4375 = vmatpush3.bf16.msra.mxu0 %v4804_v57 }
 0x156   : > { %4465 = vmatpush3.bf16.msra.mxu1 %v4809_v45  ;;  %4376 = vmatprep.subr.bf16.mxu0 %v4806_v29  ;;  %v2478_v45 = vrot.slane %v5565_v36, 4  ;;  %v2473_v29 = vsel %vm901_vm1, %v2468_v38, %v2472_v19 }
 0x157   : > { %4466 = vmatprep.subr.bf16.mxu1 %v4811_v47 }
 0x158   : > { %v5577_v1 = vsel %vm901_vm1, %v2474_v3, %v2478_v45 }
 0x159   : > { %2668 = vmatmul.mubr.bf16.gmra.mrb[104].mxu1 %v2461_v50  ;;  %4377 = vmatpush3.bf16.msra.mxu0 %v4808_v20  ;;  %v2125_v20 = vld [vmem:[#allocation2 + $0xc0] sm:$0xff] }
 0x15a   : > { %2674 = vmatprep.mubr.bf16.mxu1 %v5539_v40  ;;  %4467 = vmatpush3.bf16.msra.mxu1 %v4813_v55 }
 0x15b   : > { %4468 = vmatprep.subr.bf16.mxu1 %v4815_v56  ;;  %4378 = vmatprep.subr.bf16.mxu0 %v4810_v6  ;;  %v3858_v15 = vpop.f32.mrb[0].mxu0  ;;  %v2476_v6 = vrot.slane %v2125_v20, 4 }
 0x15c   : > { %v3946_v13 = vpop.f32.mrb[0].mxu1  ;;  %2351 = vmatmul.mubr.bf16.gmra.mrb[104].mxu0 %v2119_v59  ;;  %v3859_v32 = vpop.f32.mrb[1].mxu0 }
 0x15d   : > { %v3947_v62 = vpop.f32.mrb[1].mxu1  ;;  %2357 = vmatprep.mubr.bf16.mxu0 %v5541_v61  ;;  %4379 = vmatpush3.bf16.msra.mxu0 %v4812_v17  ;;  %v3860_v23 = vadd.f32 %v3859_v32, %v3858_v15  ;;  %v3861_v4 = vpop.f32.mrb[2].mxu0  ;;  %v2127_v15 = vld [vmem:[#allocation2 + $0xd8] sm:$0xff] }
 0x15e   : > { %v3948_v41 = vadd.f32 %v3947_v62, %v3946_v13  ;;  %v3949_v42 = vpop.f32.mrb[2].mxu1  ;;  %4469 = vmatpush3.bf16.msra.mxu1 %v4817_v0  ;;  %4380 = vmatprep.subr.bf16.mxu0 %v4814_v9  ;;  %v3862_v54 = vpop.f32.mrb[3].mxu0  ;;  %v2477_v9 = vsel %vm901_vm1, %v2472_v19, %v2476_v6  ;;  %v5591_v32 = vld [vmem:[#allocation2 + $0xf8] sm:$0xff] }
 0x15f   : > { %v3950_v14 = vpop.f32.mrb[3].mxu1  ;;  %4470 = vmatprep.subr.bf16.mxu1 %v4819_v2  ;;  %v3863_v35 = vadd.f32 %v3862_v54, %v3861_v4 }
 0x160   : > { %v3951_v30 = vadd.f32 %v3950_v14, %v3949_v42  ;;  %v1324_v39 = vadd.f32 %v3948_v41, %v3860_v23  ;;  %v5580_v41 = vld [vmem:[#allocation2 + $0xe0] sm:$0xff] }
 0x161   : > { %2675 = vmatmul.mubr.bf16.gmra.mrb[108].mxu1 %v2465_v5  ;;  %4381 = vmatpush3.bf16.msra.mxu0 %v4816_v12  ;;  %v2482_v42 = vrot.slane %v5580_v41, 4 }
 0x162   : > { %2682 = vmatprep.mubr.bf16.mxu1 %v5548_v63  ;;  %4471 = vmatpush3.bf16.msra.mxu1 %v4821_v7  ;;  %v1416_v46 = vadd.f32 %v5563_v31, %v1324_v39  ;;  %v1327_v47 = vadd.f32 %v3951_v30, %v3863_v35 }
 0x163   : > { %4472 = vmatprep.subr.bf16.mxu1 %v4823_v8  ;;  %4382 = vmatprep.subr.bf16.mxu0 %v4818_v51  ;;  %v3864_v56 = vpop.f32.mrb[4].mxu0  ;;  %v5588_v3 = vsel %vm901_vm1, %v2478_v45, %v2482_v42 }
 0x164   : > { %v3952_v11 = vpop.f32.mrb[4].mxu1  ;;  %2358 = vmatmul.mubr.bf16.gmra.mrb[108].mxu0 %v2121_v25  ;;  %1432 = vst [vmem:[%s5571_s26] sm:$0xff] %v1416_v46  ;;  %v1417_v55 = vadd.f32 %v5563_v31, %v1327_v47  ;;  %v3865_v52 = vpop.f32.mrb[5].mxu0  ;;  %v5602_v56 = vld [vmem:[#allocation2 + $0x110] sm:$0xff] }
 0x165   : > { %v3953_v10 = vpop.f32.mrb[5].mxu1  ;;  %2365 = vmatprep.mubr.bf16.mxu0 %v5550_v37  ;;  %4383 = vmatpush3.bf16.msra.mxu0 %v4820_v28  ;;  %v3867_v2 = vpop.f32.mrb[6].mxu0 }
 0x166   : > { %v3955_v16 = vpop.f32.mrb[6].mxu1  ;;  %4473 = vmatpush3.bf16.msra.mxu1 %v4825_v60  ;;  %4384 = vmatprep.subr.bf16.mxu0 %v4822_v34  ;;  %1433 = vst [vmem:[%s5571_s26 + $0x8] sm:$0xff] %v1417_v55  ;;  %v3868_v13 = vpop.f32.mrb[7].mxu0 }
 0x167   : > { %v3956_v22 = vpop.f32.mrb[7].mxu1  ;;  %v3869_v62 = vadd.f32 %v3868_v13, %v3867_v2 }
 0x168   : > { %v3957_v27 = vadd.f32 %v3956_v22, %v3955_v16  ;;  %v2486_v22 = vrot.slane %v5591_v32, 4 }
 0x169   : > { %2683 = vmatmul.mubr.bf16.gmra.mrb[112].mxu1 %v2469_v53  ;;  %4385 = vmatpush3.bf16.msra.mxu0 %v4824_v26  ;;  %v2480_v53 = vrot.slane %v2127_v15, 4 }
 0x16a   : > { %2689 = vmatprep.mubr.bf16.mxu1 %v5557_v49  ;;  %v1334_v5 = vadd.f32 %v3957_v27, %v3869_v62  ;;  %v5600_v35 = vsel %vm901_vm1, %v2482_v42, %v2486_v22 }
 0x16b   : > { %v3870_v30 = vpop.f32.mrb[8].mxu0 }
 0x16c   : > { %v3958_v48 = vpop.f32.mrb[8].mxu1  ;;  %2366 = vmatmul.mubr.bf16.gmra.mrb[112].mxu0 %v2123_v58  ;;  %v1418_v8 = vadd.f32 %v5563_v31, %v1334_v5  ;;  %v3871_v38 = vpop.f32.mrb[9].mxu0  ;;  %v2481_v58 = vsel %vm901_vm1, %v2476_v6, %v2480_v53 }
 0x16d   : > { %v3959_v50 = vpop.f32.mrb[9].mxu1  ;;  %2372 = vmatprep.mubr.bf16.mxu0 %v5565_v36  ;;  %v3872_v11 = vadd.f32 %v3871_v38, %v3870_v30  ;;  %v3873_v12 = vpop.f32.mrb[10].mxu0  ;;  %v2131_v30 = vld [vmem:[#allocation2 + $0x108] sm:$0xff] }
 0x16e   : > { %v3960_v57 = vadd.f32 %v3959_v50, %v3958_v48  ;;  %v3961_v59 = vpop.f32.mrb[10].mxu1  ;;  %1434 = vst [vmem:[%s5571_s26 + $0x10] sm:$0xff] %v1418_v8  ;;  %v3874_v51 = vpop.f32.mrb[11].mxu0  ;;  %v2129_v48 = vld [vmem:[#allocation2 + $0xf0] sm:$0xff] }
 0x16f   : > { %v3962_v0 = vpop.f32.mrb[11].mxu1  ;;  %v2484_v55 = vrot.slane %v2129_v48, 4 }
 0x170   : > { %v1339_v16 = vadd.f32 %v3960_v57, %v3872_v11  ;;  %v2490_v57 = vrot.slane %v5602_v56, 4 }
 0x171   : > { %2690 = vmatmul.mubr.bf16.gmra.mrb[116].mxu1 %v2473_v29  ;;  %v2485_v6 = vsel %vm901_vm1, %v2480_v53, %v2484_v55 }
 0x172   : > { %2696 = vmatprep.mubr.bf16.mxu1 %v5577_v1  ;;  %v1419_v23 = vadd.f32 %v5563_v31, %v1339_v16 }
 0x173   : > { %v3876_v28 = vpop.f32.mrb[12].mxu0 }
 0x174   : > { %v3964_v7 = vpop.f32.mrb[12].mxu1  ;;  %2373 = vmatmul.mubr.bf16.gmra.mrb[116].mxu0 %v2125_v20  ;;  %1435 = vst [vmem:[%s5571_s26 + $0x18] sm:$0xff] %v1419_v23  ;;  %v3877_v34 = vpop.f32.mrb[13].mxu0 }
 0x175   : > { %v3965_v14 = vpop.f32.mrb[13].mxu1  ;;  %2379 = vmatprep.mubr.bf16.mxu0 %v5580_v41  ;;  %v3878_v19 = vadd.f32 %v3877_v34, %v3876_v28  ;;  %v3879_v45 = vpop.f32.mrb[14].mxu0 }
 0x176   : > { %v3966_v17 = vadd.f32 %v3965_v14, %v3964_v7  ;;  %v3967_v25 = vpop.f32.mrb[14].mxu1  ;;  %v3880_v47 = vpop.f32.mrb[15].mxu0  ;;  %v5612_v7 = vsel %vm901_vm1, %v2486_v22, %v2490_v57 }
 0x177   : > { %v3968_v60 = vpop.f32.mrb[15].mxu1  ;;  %v3881_v50 = vadd.f32 %v3880_v47, %v3879_v45 }
 0x178   : > { %v3969_v10 = vadd.f32 %v3968_v60, %v3967_v25  ;;  %v1346_v26 = vadd.f32 %v3966_v17, %v3878_v19  ;;  %v2488_v25 = vrot.slane %v2131_v30, 4 }
 0x179   : > { %2697 = vmatmul.mubr.bf16.gmra.mrb[120].mxu1 %v2477_v9  ;;  %v5615_v9 = vld [vmem:[#allocation2 + $0x128] sm:$0xff] }
 0x17a   : > { %2704 = vmatprep.mubr.bf16.mxu1 %v5588_v3  ;;  %v1420_v59 = vadd.f32 %v5563_v31, %v1346_v26  ;;  %v1349_v29 = vadd.f32 %v3969_v10, %v3881_v50  ;;  %v5619_v38 = vrot.slane %v5615_v9, 4  ;;  %v2489_v53 = vsel %vm901_vm1, %v2484_v55, %v2488_v25 }
 0x17b   : > { %v3882_v13 = vpop.f32.mrb[16].mxu0 }
 0x17c   : > { %v3970_v4 = vpop.f32.mrb[16].mxu1  ;;  %2380 = vmatmul.mubr.bf16.gmra.mrb[120].mxu0 %v2127_v15  ;;  %1436 = vst [vmem:[%s5571_s26 + $0x20] sm:$0xff] %v1420_v59  ;;  %v1421_v2 = vadd.f32 %v5563_v31, %v1349_v29  ;;  %v3883_v42 = vpop.f32.mrb[17].mxu0 }
 0x17d   : > { %v3971_v27 = vpop.f32.mrb[17].mxu1  ;;  %2387 = vmatprep.mubr.bf16.mxu0 %v5591_v32  ;;  %v3885_v14 = vpop.f32.mrb[18].mxu0  ;;  %v5626_v4 = vsel %vm901_vm1, %v2490_v57, %v5619_v38 }
 0x17e   : > { %v3973_v54 = vpop.f32.mrb[18].mxu1  ;;  %1437 = vst [vmem:[%s5571_s26 + $0x28] sm:$0xff] %v1421_v2  ;;  %v3886_v8 = vpop.f32.mrb[19].mxu0 }
 0x17f   : > { %v3974_v39 = vpop.f32.mrb[19].mxu1  ;;  %v3887_v17 = vadd.f32 %v3886_v8, %v3885_v14 }
 0x180   : > { %v3975_v46 = vadd.f32 %v3974_v39, %v3973_v54  ;;  %v2133_v39 = vld [vmem:[#allocation2 + $0x120] sm:$0xff] }
 0x181   : > { %2705 = vmatmul.mubr.bf16.gmra.mrb[124].mxu1 %v2481_v58  ;;  %v2136_v58 = vld [vmem:[#allocation2 + $0x140] sm:$0xf]  ;;  %v2492_v45 = vrot.slane %v2133_v39, 4 }
 0x182   : > { %2711 = vmatprep.mubr.bf16.mxu1 %v5600_v35  ;;  %v1356_v60 = vadd.f32 %v3975_v46, %v3887_v17  ;;  %v2498_v46 = vrot.slane %v2136_v58, 4  ;;  %v2774_v58 = vld [vmem:[#allocation2 + $0x20] sm:$0xf0] }
 0x183   : > { %v3888_v51 = vpop.f32.mrb[20].mxu0  ;;  %v2493_v57 = vsel %vm901_vm1, %v2488_v25, %v2492_v45 }
 0x184   : > { %v3976_v52 = vpop.f32.mrb[20].mxu1  ;;  %2388 = vmatmul.mubr.bf16.gmra.mrb[124].mxu0 %v2129_v48  ;;  %v1422_v10 = vadd.f32 %v5563_v31, %v1356_v60  ;;  %v3889_v22 = vpop.f32.mrb[21].mxu0 }
 0x185   : > { %v3977_v0 = vpop.f32.mrb[21].mxu1  ;;  %2394 = vmatprep.mubr.bf16.mxu0 %v5602_v56  ;;  %v3890_v27 = vadd.f32 %v3889_v22, %v3888_v51  ;;  %v3891_v28 = vpop.f32.mrb[22].mxu0 }
 0x186   : > { %v3978_v20 = vadd.f32 %v3977_v0, %v3976_v52  ;;  %v3979_v62 = vpop.f32.mrb[22].mxu1  ;;  %1438 = vst [vmem:[%s5571_s26 + $0x30] sm:$0xff] %v1422_v10  ;;  %v3892_v34 = vpop.f32.mrb[23].mxu0  ;;  %v2499_v52 = vsel %vm901_vm1, %v5619_v38, %v2498_v46  ;;  %v2135_v0 = vld [vmem:[#allocation2 + $0x138] sm:$0xf] }
 0x187   : > { %v3980_v5 = vpop.f32.mrb[23].mxu1  ;;  %v2775_v62 = vld [vmem:[#allocation2 + $0x28] sm:$0xf0] }
 0x188   : > { %v1361_v19 = vadd.f32 %v3978_v20, %v3890_v27  ;;  %v5636_v5 = vld [vmem:[#allocation2 + $0x140] sm:$0xff]  ;;  %v3136_v17 = vrot.slane %v2775_v62, 4 }
 0x189   : > { %2712 = vmatmul.mubr.bf16.gmra.mrb[128].mxu1 %v2485_v6  ;;  %v2777_v6 = vld [vmem:[#allocation2 + $0x40] sm:$0xff] }
 0x18a   : > { %2718 = vmatprep.mubr.bf16.mxu1 %v5612_v7  ;;  %v1423_v47 = vadd.f32 %v5563_v31, %v1361_v19  ;;  %v3137_v25 = vrot.slane %v2777_v6, 4  ;;  %v5645_v19 = vld [vmem:[#allocation2 + $0x158] sm:$0xff] }
 0x18b   : > { %v3894_v50 = vpop.f32.mrb[24].mxu0 }
 0x18c   : > { %v3982_v11 = vpop.f32.mrb[24].mxu1  ;;  %2395 = vmatmul.mubr.bf16.gmra.mrb[128].mxu0 %v2131_v30  ;;  %1439 = vst [vmem:[%s5571_s26 + $0x38] sm:$0xff] %v1423_v47  ;;  %v3895_v59 = vpop.f32.mrb[25].mxu0  ;;  %v2496_v30 = vrot.slane %v2135_v0, 4  ;;  %v3138_v28 = vsel %vm901_vm1, %v3136_v17, %v3137_v25  ;;  %v2801_v47 = vld [vmem:[#allocation2 + $0x58] sm:$0xff]  ;;  %v2803_v17 = vld [vmem:[#allocation2 + $0x70] sm:$0xff] }
 0x18d   : > { %v3983_v12 = vpop.f32.mrb[25].mxu1  ;;  %2401 = vmatprep.mubr.bf16.mxu0 %v5615_v9  ;;  %v3896_v2 = vadd.f32 %v3895_v59, %v3894_v50  ;;  %v3897_v13 = vpop.f32.mrb[26].mxu0 }
 0x18e   : > { %v3984_v15 = vadd.f32 %v3983_v12, %v3982_v11  ;;  %v3985_v16 = vpop.f32.mrb[26].mxu1  ;;  %v3898_v42 = vpop.f32.mrb[27].mxu0  ;;  %v2497_v22 = vsel %vm901_vm1, %v2492_v45, %v2496_v30 }
 0x18f   : > { %v3986_v23 = vpop.f32.mrb[27].mxu1  ;;  %v3899_v8 = vadd.f32 %v3898_v42, %v3897_v13  ;;  %v2139_v42 = vld [vmem:[#allocation2 + $0x150] sm:$0xff] }
 0x190   : > { %v3987_v54 = vadd.f32 %v3986_v23, %v3985_v16  ;;  %v1368_v14 = vadd.f32 %v3984_v15, %v3896_v2 }
 0x191   : > { %2719 = vmatmul.mubr.bf16.gmra.mrb[132].mxu1 %v2489_v53 }
 0x192   : > { %2726 = vmatprep.mubr.bf16.mxu1 %v5626_v4  ;;  %v1424_v60 = vadd.f32 %v5563_v31, %v1368_v14  ;;  %v1371_v11 = vadd.f32 %v3987_v54, %v3899_v8  ;;  %v2137_v54 = vld [vmem:[#allocation2 + $0x138] sm:$0xff] }
 0x194   : > { %v3988_v48 = vpop.f32.mrb[28].mxu1  ;;  %2402 = vmatmul.mubr.bf16.gmra.mrb[132].mxu0 %v2133_v39  ;;  %1440 = vst [vmem:[%s5571_s26 + $0x40] sm:$0xff] %v1424_v60  ;;  %v1425_v51 = vadd.f32 %v5563_v31, %v1371_v11  ;;  %v3145_v60 = vrot.slane %v2803_v17, 4 }
 0x195   : > { %v3989_v26 = vpop.f32.mrb[29].mxu1  ;;  %2409 = vmatprep.mubr.bf16.mxu0 %v5636_v5  ;;  %v3133_v48 = vrot.slane %v2774_v58, 4 }
 0x196   : > { %v3991_v55 = vpop.f32.mrb[30].mxu1  ;;  %1441 = vst [vmem:[%s5571_s26 + $0x48] sm:$0xff] %v1425_v51  ;;  %v3141_v26 = vrot.slane %v2801_v47, 4 }
 0x197   : > { %v3992_v29 = vpop.f32.mrb[31].mxu1  ;;  %v3900_v16 = vpop.f32.mrb[28].mxu0  ;;  %v3135_v0 = vsel %vm901_vm1, %v3133_v48, %v5506_v18 }
 0x198   : > { %v3993_v20 = vadd.f32 %v3992_v29, %v3991_v55  ;;  %v3901_v23 = vpop.f32.mrb[29].mxu0  ;;  %v3142_v62 = vsel %vm901_vm1, %v3137_v25, %v3141_v26 }
 0x199   : > { %2727 = vmatmul.mubr.bf16.gmra.mrb[136].mxu1 %v2493_v57  ;;  %v3903_v34 = vpop.f32.mrb[30].mxu0 }
 0x19a   : > { %2733 = vmatprep.mubr.bf16.mxu1 %v2499_v52  ;;  %v3904_v39 = vpop.f32.mrb[31].mxu0 }
 0x19b   : > { %v3905_v46 = vadd.f32 %v3904_v39, %v3903_v34  ;;  %v2805_v34 = vld [vmem:[#allocation2 + $0x88] sm:$0xff] }
 0x19c   : > { %v3994_v12 = vpop.f32.mrb[32].mxu1  ;;  %2410 = vmatmul.mubr.bf16.gmra.mrb[136].mxu0 %v2137_v54  ;;  %v3149_v54 = vrot.slane %v2805_v34, 4 }
 0x19d   : > { %v3995_v10 = vpop.f32.mrb[33].mxu1  ;;  %v1378_v45 = vadd.f32 %v3993_v20, %v3905_v46  ;;  %2416 = vmatprep.mubr.bf16.mxu0 %v5645_v19 }
 0x19e   : > { %v3996_v53 = vadd.f32 %v3995_v10, %v3994_v12  ;;  %v3997_v15 = vpop.f32.mrb[34].mxu1 }
 0x19f   : > { %v3998_v27 = vpop.f32.mrb[35].mxu1  ;;  %v1426_v57 = vadd.f32 %v5563_v31, %v1378_v45  ;;  %v3906_v59 = vpop.f32.mrb[32].mxu0  ;;  %v3146_v15 = vsel %vm901_vm1, %v3141_v26, %v3145_v60 }
 0x1a0   : > { %v3907_v2 = vpop.f32.mrb[33].mxu0 }
 0x1a1   : > { %2734 = vmatmul.mubr.bf16.gmra.mrb[140].mxu1 %v2497_v22  ;;  %1442 = vst [vmem:[%s5571_s26 + $0x50] sm:$0xff] %v1426_v57  ;;  %v3908_v6 = vadd.f32 %v3907_v2, %v3906_v59  ;;  %v3909_v20 = vpop.f32.mrb[34].mxu0  ;;  %v3150_v59 = vsel %vm901_vm1, %v3145_v60, %v3149_v54 }
 0x1a2   : > { %3335 = vmatprep.mubr.bf16.mxu1 %v3138_v28  ;;  %v3910_v8 = vpop.f32.mrb[35].mxu0 }
 0x1a3   : > { %v1383_v30 = vadd.f32 %v3996_v53, %v3908_v6 }
 0x1a4   : > { %v4000_v50 = vpop.f32.mrb[36].mxu1  ;;  %2417 = vmatmul.mubr.bf16.gmra.mrb[140].mxu0 %v2139_v42 }
 0x1a5   : > { %v4001_v55 = vpop.f32.mrb[37].mxu1  ;;  %v1427_v11 = vadd.f32 %v5563_v31, %v1383_v30  ;;  %3018 = vmatprep.mubr.bf16.mxu0 %v2801_v47 }
 0x1a6   : > { %v4002_v29 = vadd.f32 %v4001_v55, %v4000_v50  ;;  %v4003_v52 = vpop.f32.mrb[38].mxu1 }
 0x1a7   : > { %v4004_v13 = vpop.f32.mrb[39].mxu1  ;;  %1443 = vst [vmem:[%s5571_s26 + $0x58] sm:$0xff] %v1427_v11  ;;  %v3912_v25 = vpop.f32.mrb[36].mxu0 }
 0x1a8   : > { %v4005_v14 = vadd.f32 %v4004_v13, %v4003_v52  ;;  %v3913_v51 = vpop.f32.mrb[37].mxu0 }
 0x1a9   : > { %3336 = vmatmul.mubr.bf16.vlgmr.msra.gmra.mrb[144].mxu1 %v3135_v0  ;;  %v3914_v22 = vadd.f32 %v3913_v51, %v3912_v25  ;;  %v3915_v23 = vpop.f32.mrb[38].mxu0  ;;  %v2807_v0 = vld [vmem:[#allocation2 + $0xa0] sm:$0xff]  ;;  %v2809_v25 = vld [vmem:[#allocation2 + $0xb8] sm:$0xff] }
 0x1aa   : > { %3343 = vmatprep.mubr.bf16.mxu1 %v3142_v62  ;;  %v3916_v27 = vpop.f32.mrb[39].mxu0  ;;  %v3153_v2 = vrot.slane %v2807_v0, 4 }
 0x1ab   : > { %v1390_v28 = vadd.f32 %v4002_v29, %v3914_v22  ;;  %v3917_v58 = vadd.f32 %v3916_v27, %v3915_v23 }
 0x1ac   : > { %v4006_v18 = vpop.f32.mrb[40].mxu1  ;;  %3019 = vmatmul.mubr.bf16.vlgmr.msra.gmra.mrb[144].mxu0 %v5512_v43 }
 0x1ad   : > { %v4007_v12 = vpop.f32.mrb[41].mxu1  ;;  %v1428_v39 = vadd.f32 %v5563_v31, %v1390_v28  ;;  %v1393_v46 = vadd.f32 %v4005_v14, %v3917_v58  ;;  %3026 = vmatprep.mubr.bf16.mxu0 %v2803_v17 }
 0x1ae   : > { %v4009_v10 = vpop.f32.mrb[42].mxu1 }
 0x1af   : > { %v4010_v16 = vpop.f32.mrb[43].mxu1  ;;  %1444 = vst [vmem:[%s5571_s26 + $0x60] sm:$0xff] %v1428_v39  ;;  %v1429_v26 = vadd.f32 %v5563_v31, %v1393_v46  ;;  %v3918_v45 = vpop.f32.mrb[40].mxu0  ;;  %v2811_v46 = vld [vmem:[#allocation2 + $0xd0] sm:$0xff] }
 0x1b0   : > { %v4011_v53 = vadd.f32 %v4010_v16, %v4009_v10  ;;  %v3919_v55 = vpop.f32.mrb[41].mxu0  ;;  %v3157_v10 = vrot.slane %v2809_v25, 4 }
 0x1b1   : > { %3344 = vmatmul.mubr.bf16.gmra.mrb[148].mxu1 %v5519_v21  ;;  %1445 = vst [vmem:[%s5571_s26 + $0x68] sm:$0xff] %v1429_v26  ;;  %v3921_v29 = vpop.f32.mrb[42].mxu0 }
 0x1b2   : > { %3350 = vmatprep.mubr.bf16.mxu1 %v3146_v15  ;;  %v3922_v43 = vpop.f32.mrb[43].mxu0  ;;  %v3158_v28 = vsel %vm901_vm1, %v3153_v2, %v3157_v10 }
 0x1b3   : > { %v3923_v52 = vadd.f32 %v3922_v43, %v3921_v29 }
 0x1b4   : > { %v4012_v47 = vpop.f32.mrb[44].mxu1  ;;  %3027 = vmatmul.mubr.bf16.gmra.mrb[148].mxu0 %v5523_v24 }
 0x1b5   : > { %v4013_v48 = vpop.f32.mrb[45].mxu1  ;;  %v1400_v13 = vadd.f32 %v4011_v53, %v3923_v52  ;;  %3033 = vmatprep.mubr.bf16.mxu0 %v2805_v34 }
 0x1b6   : > { %v4014_v50 = vadd.f32 %v4013_v48, %v4012_v47  ;;  %v4015_v21 = vpop.f32.mrb[46].mxu1  ;;  %v3161_v47 = vrot.slane %v2811_v46, 4 }
 0x1b7   : > { %v4016_v57 = vpop.f32.mrb[47].mxu1  ;;  %v1430_v20 = vadd.f32 %v5563_v31, %v1400_v13  ;;  %v3924_v42 = vpop.f32.mrb[44].mxu0 }
 0x1b8   : > { %v3925_v30 = vpop.f32.mrb[45].mxu0  ;;  %v3162_v43 = vsel %vm901_vm1, %v3157_v10, %v3161_v47 }
 0x1b9   : > { %3351 = vmatmul.mubr.bf16.gmra.mrb[152].mxu1 %v5530_v33  ;;  %v3154_v33 = vsel %vm901_vm1, %v3149_v54, %v3153_v2  ;;  %1446 = vst [vmem:[%s5571_s26 + $0x70] sm:$0xff] %v1430_v20  ;;  %v3926_v60 = vadd.f32 %v3925_v30, %v3924_v42  ;;  %v3927_v11 = vpop.f32.mrb[46].mxu0  ;;  %v2813_v2 = vld [vmem:[#allocation2 + $0xe8] sm:$0xff] }
 0x1ba   : > { %3357 = vmatprep.mubr.bf16.mxu1 %v3150_v59  ;;  %v3928_v24 = vpop.f32.mrb[47].mxu0  ;;  %v3165_v13 = vrot.slane %v2813_v2, 4 }
 0x1bb   : > { %v1405_v12 = vadd.f32 %v4014_v50, %v3926_v60 }
 0x1bc   : > { %v4122_v62 = vpop.f32.mrb[48].mxu1  ;;  %3034 = vmatmul.mubr.bf16.gmra.mrb[152].mxu0 %v5532_v44 }
 0x1bd   : > { %v4123_v6 = vpop.f32.mrb[49].mxu1  ;;  %v1431_v51 = vadd.f32 %v5563_v31, %v1405_v12  ;;  %3040 = vmatprep.mubr.bf16.mxu0 %v2807_v0  ;;  %v2815_v12 = vld [vmem:[#allocation2 + $0x100] sm:$0xff] }
 0x1be   : > { %v4124_v14 = vadd.f32 %v4123_v6, %v4122_v62  ;;  %v4125_v8 = vpop.f32.mrb[50].mxu1 }
 0x1bf   : > { %v4126_v17 = vpop.f32.mrb[51].mxu1  ;;  %1447 = vst [vmem:[%s5571_s26 + $0x78] sm:$0xff] %v1431_v51  ;;  %v4034_v22 = vpop.f32.mrb[48].mxu0 }
 0x1c0   : > { %v4127_v18 = vadd.f32 %v4126_v17, %v4125_v8  ;;  %v4035_v53 = vpop.f32.mrb[49].mxu0 }
 0x1c1   : > { %3358 = vmatmul.mubr.bf16.gmra.mrb[156].mxu1 %v5539_v40  ;;  %v4036_v58 = vadd.f32 %v4035_v53, %v4034_v22  ;;  %v4037_v40 = vpop.f32.mrb[50].mxu0 }
 0x1c2   : > { %3365 = vmatprep.mubr.bf16.mxu1 %v3154_v33  ;;  %v4038_v54 = vpop.f32.mrb[51].mxu0 }
 0x1c3   : > { %v1992_v44 = vadd.f32 %v4124_v14, %v4036_v58  ;;  %v4039_v39 = vadd.f32 %v4038_v54, %v4037_v40  ;;  %v2817_v54 = vld [vmem:[#allocation2 + $0x118] sm:$0xff] }
 0x1c4   : > { %v4128_v16 = vpop.f32.mrb[52].mxu1  ;;  %3041 = vmatmul.mubr.bf16.gmra.mrb[156].mxu0 %v5541_v61 }
 0x1c5   : > { %v4129_v15 = vpop.f32.mrb[53].mxu1  ;;  %v2078_v48 = vadd.f32 %v5563_v31, %v1992_v44  ;;  %v1995_v26 = vadd.f32 %v4127_v18, %v4039_v39  ;;  %3048 = vmatprep.mubr.bf16.mxu0 %v2809_v25  ;;  %v3169_v25 = vrot.slane %v2815_v12, 4  ;;  %v3173_v44 = vrot.slane %v2817_v54, 4 }
 0x1c6   : > { %v4131_v23 = vpop.f32.mrb[54].mxu1 }
 0x1c7   : > { %v4132_v27 = vpop.f32.mrb[55].mxu1  ;;  %3722 = vst [vmem:[%s5571_s26 + $0x80] sm:$0xff] %v2078_v48  ;;  %v2079_v21 = vadd.f32 %v5563_v31, %v1995_v26  ;;  %v4040_v55 = vpop.f32.mrb[52].mxu0 }
 0x1c8   : > { %v4133_v34 = vadd.f32 %v4132_v27, %v4131_v23  ;;  %v4041_v59 = vpop.f32.mrb[53].mxu0  ;;  %v3170_v27 = vsel %vm901_vm1, %v3165_v13, %v3169_v25 }
 0x1c9   : > { %3366 = vmatmul.mubr.bf16.gmra.mrb[160].mxu1 %v5548_v63  ;;  %3723 = vst [vmem:[%s5571_s26 + $0x88] sm:$0xff] %v2079_v21  ;;  %v4043_v52 = vpop.f32.mrb[54].mxu0 }
 0x1ca   : > { %3372 = vmatprep.mubr.bf16.mxu1 %v3158_v28  ;;  %v4044_v61 = vpop.f32.mrb[55].mxu0 }
 0x1cb   : > { %v4045_v0 = vadd.f32 %v4044_v61, %v4043_v52 }
 0x1cc   : > { %v4134_v45 = vpop.f32.mrb[56].mxu1  ;;  %3049 = vmatmul.mubr.bf16.gmra.mrb[160].mxu0 %v5550_v37 }
 0x1cd   : > { %v4135_v50 = vpop.f32.mrb[57].mxu1  ;;  %v2002_v62 = vadd.f32 %v4133_v34, %v4045_v0  ;;  %3055 = vmatprep.mubr.bf16.mxu0 %v2811_v46 }
 0x1ce   : > { %v4136_v57 = vadd.f32 %v4135_v50, %v4134_v45  ;;  %v4137_v63 = vpop.f32.mrb[58].mxu1 }
 0x1cf   : > { %v4138_v29 = vpop.f32.mrb[59].mxu1  ;;  %v2080_v42 = vadd.f32 %v5563_v31, %v2002_v62  ;;  %v4046_v14 = vpop.f32.mrb[56].mxu0 }
 0x1d0   : > { %v4047_v17 = vpop.f32.mrb[57].mxu0  ;;  %v2819_v29 = vld [vmem:[#allocation2 + $0x130] sm:$0xff] }
 0x1d1   : > { %3373 = vmatmul.mubr.bf16.gmra.mrb[164].mxu1 %v5557_v49  ;;  %v3166_v49 = vsel %vm901_vm1, %v3161_v47, %v3165_v13  ;;  %3724 = vst [vmem:[%s5571_s26 + $0x90] sm:$0xff] %v2080_v42  ;;  %v4048_v60 = vadd.f32 %v4047_v17, %v4046_v14  ;;  %v4049_v11 = vpop.f32.mrb[58].mxu0 }
 0x1d2   : > { %3379 = vmatprep.mubr.bf16.mxu1 %v3162_v43  ;;  %v4050_v37 = vpop.f32.mrb[59].mxu0  ;;  %v3177_v43 = vrot.slane %v2819_v29, 4 }
 0x1d3   : > { %v2007_v24 = vadd.f32 %v4136_v57, %v4048_v60  ;;  %v3174_v57 = vsel %vm901_vm1, %v3169_v25, %v3173_v44 }
 0x1d4   : > { %v4140_v6 = vpop.f32.mrb[60].mxu1  ;;  %3056 = vmatmul.mubr.bf16.gmra.mrb[164].mxu0 %v5565_v36 }
 0x1d5   : > { %v4141_v20 = vpop.f32.mrb[61].mxu1  ;;  %v2081_v10 = vadd.f32 %v5563_v31, %v2007_v24  ;;  %3062 = vmatprep.mubr.bf16.mxu0 %v2813_v2 }
 0x1d6   : > { %v4142_v8 = vadd.f32 %v4141_v20, %v4140_v6  ;;  %v4143_v30 = vpop.f32.mrb[62].mxu1 }
 0x1d7   : > { %v4144_v33 = vpop.f32.mrb[63].mxu1  ;;  %3725 = vst [vmem:[%s5571_s26 + $0x98] sm:$0xff] %v2081_v10  ;;  %v4052_v15 = vpop.f32.mrb[60].mxu0 }
 0x1d8   : > { %v4145_v18 = vadd.f32 %v4144_v33, %v4143_v30  ;;  %v4053_v23 = vpop.f32.mrb[61].mxu0 }
 0x1d9   : > { %3380 = vmatmul.mubr.bf16.gmra.mrb[168].mxu1 %v5577_v1  ;;  %v4054_v28 = vadd.f32 %v4053_v23, %v4052_v15  ;;  %v4055_v1 = vpop.f32.mrb[62].mxu0 }
 0x1da   : > { %3387 = vmatprep.mubr.bf16.mxu1 %v3166_v49  ;;  %v4056_v40 = vpop.f32.mrb[63].mxu0 }
 0x1db   : > { %v2014_v36 = vadd.f32 %v4142_v8, %v4054_v28  ;;  %v4057_v34 = vadd.f32 %v4056_v40, %v4055_v1 }
 0x1dc   : > { %v4146_v51 = vpop.f32.mrb[64].mxu1  ;;  %3063 = vmatmul.mubr.bf16.gmra.mrb[168].mxu0 %v5580_v41 }
 0x1dd   : > { %v4147_v16 = vpop.f32.mrb[65].mxu1  ;;  %v2082_v39 = vadd.f32 %v5563_v31, %v2014_v36  ;;  %v2017_v46 = vadd.f32 %v4145_v18, %v4057_v34  ;;  %3070 = vmatprep.mubr.bf16.mxu0 %v2815_v12  ;;  %v2798_v51 = vld [vmem:[#allocation2 + $0x140] sm:$0xf] }
 0x1de   : > { %v4149_v22 = vpop.f32.mrb[66].mxu1 }
 0x1df   : > { %v4150_v53 = vpop.f32.mrb[67].mxu1  ;;  %3726 = vst [vmem:[%s5571_s26 + $0xa0] sm:$0xff] %v2082_v39  ;;  %v2083_v26 = vadd.f32 %v5563_v31, %v2017_v46  ;;  %v4058_v45 = vpop.f32.mrb[64].mxu0 }
 0x1e0   : > { %v4151_v58 = vadd.f32 %v4150_v53, %v4149_v22  ;;  %v4059_v21 = vpop.f32.mrb[65].mxu0 }
 0x1e1   : > { %3388 = vmatmul.mubr.bf16.gmra.mrb[172].mxu1 %v5588_v3  ;;  %3727 = vst [vmem:[%s5571_s26 + $0xa8] sm:$0xff] %v2083_v26  ;;  %v4061_v63 = vpop.f32.mrb[66].mxu0 }
 0x1e2   : > { %3394 = vmatprep.mubr.bf16.mxu1 %v3170_v27  ;;  %v4062_v41 = vpop.f32.mrb[67].mxu0  ;;  %v3179_v27 = vrot.slane %v2798_v51, 4 }
 0x1e3   : > { %v4063_v59 = vadd.f32 %v4062_v41, %v4061_v63 }
 0x1e4   : > { %v4152_v47 = vpop.f32.mrb[68].mxu1  ;;  %3071 = vmatmul.mubr.bf16.gmra.mrb[172].mxu0 %v5591_v32  ;;  %v2799_v32 = vld [vmem:[#allocation2 + $0x148] sm:$0xf] }
 0x1e5   : > { %v4153_v48 = vpop.f32.mrb[69].mxu1  ;;  %v2024_v52 = vadd.f32 %v4151_v58, %v4063_v59  ;;  %3077 = vmatprep.mubr.bf16.mxu0 %v2817_v54  ;;  %v3181_v49 = vrot.slane %v2799_v32, 4 }
 0x1e6   : > { %v4154_v50 = vadd.f32 %v4153_v48, %v4152_v47  ;;  %v4155_v3 = vpop.f32.mrb[70].mxu1  ;;  %v2823_v48 = vld [vmem:[#allocation2 + $0x160] sm:$0xff] }
 0x1e7   : > { %v4156_v55 = vpop.f32.mrb[71].mxu1  ;;  %v2084_v2 = vadd.f32 %v5563_v31, %v2024_v52  ;;  %v4064_v13 = vpop.f32.mrb[68].mxu0  ;;  %v3182_v10 = vsel %vm901_vm1, %v3177_v43, %v3181_v49 }
 0x1e8   : > { %v4065_v20 = vpop.f32.mrb[69].mxu0 }
 0x1e9   : > { %3395 = vmatmul.mubr.bf16.gmra.mrb[176].mxu1 %v5600_v35  ;;  %v3178_v35 = vsel %vm901_vm1, %v3173_v44, %v3177_v43  ;;  %3728 = vst [vmem:[%s5571_s26 + $0xb0] sm:$0xff] %v2084_v2  ;;  %v4066_v14 = vadd.f32 %v4065_v20, %v4064_v13  ;;  %v4067_v8 = vpop.f32.mrb[70].mxu0 }
 0x1ea   : > { %3401 = vmatprep.mubr.bf16.mxu1 %v3174_v57  ;;  %v4068_v17 = vpop.f32.mrb[71].mxu0 }
 0x1eb   : > { %v2029_v33 = vadd.f32 %v4154_v50, %v4066_v14 }
 0x1ec   : > { %v4158_v61 = vpop.f32.mrb[72].mxu1  ;;  %3078 = vmatmul.mubr.bf16.gmra.mrb[176].mxu0 %v5602_v56  ;;  %v2821_v56 = vld [vmem:[#allocation2 + $0x148] sm:$0xff] }
 0x1ed   : > { %v4159_v0 = vpop.f32.mrb[73].mxu1  ;;  %v2085_v60 = vadd.f32 %v5563_v31, %v2029_v33  ;;  %3084 = vmatprep.mubr.bf16.mxu0 %v2819_v29 }
 0x1ee   : > { %v4160_v62 = vadd.f32 %v4159_v0, %v4158_v61  ;;  %v4161_v6 = vpop.f32.mrb[74].mxu1 }
 0x1ef   : > { %v4162_v42 = vpop.f32.mrb[75].mxu1  ;;  %3729 = vst [vmem:[%s5571_s26 + $0xb8] sm:$0xff] %v2085_v60  ;;  %v4070_v37 = vpop.f32.mrb[72].mxu0 }
 0x1f0   : > { %v4163_v30 = vadd.f32 %v4162_v42, %v4161_v6  ;;  %v4071_v12 = vpop.f32.mrb[73].mxu0 }
 0x1f1   : > { %3402 = vmatmul.mubr.bf16.gmra.mrb[180].mxu1 %v5612_v7  ;;  %v4072_v16 = vadd.f32 %v4071_v12, %v4070_v37  ;;  %v4073_v7 = vpop.f32.mrb[74].mxu0 }
 0x1f2   : > { %3409 = vmatprep.mubr.bf16.mxu1 %v3178_v35  ;;  %v4074_v22 = vpop.f32.mrb[75].mxu0 }
 0x1f3   : > { %v2036_v23 = vadd.f32 %v4160_v62, %v4072_v16  ;;  %v4075_v53 = vadd.f32 %v4074_v22, %v4073_v7 }
 0x1f4   : > { %v4164_v11 = vpop.f32.mrb[76].mxu1  ;;  %3085 = vmatmul.mubr.bf16.gmra.mrb[180].mxu0 %v5615_v9 }
 0x1f5   : > { %v4165_v18 = vpop.f32.mrb[77].mxu1  ;;  %v2086_v28 = vadd.f32 %v5563_v31, %v2036_v23  ;;  %v2039_v1 = vadd.f32 %v4163_v30, %v4075_v53  ;;  %3092 = vmatprep.mubr.bf16.mxu0 %v2821_v56 }
 0x1f6   : > { %v4167_v24 = vpop.f32.mrb[78].mxu1 }
 0x1f7   : > { %v4168_v25 = vpop.f32.mrb[79].mxu1  ;;  %3730 = vst [vmem:[%s5571_s26 + $0xc0] sm:$0xff] %v2086_v28  ;;  %v2087_v36 = vadd.f32 %v5563_v31, %v2039_v1  ;;  %v4076_v34 = vpop.f32.mrb[76].mxu0 }
 0x1f8   : > { %v4169_v15 = vadd.f32 %v4168_v25, %v4167_v24  ;;  %v4077_v39 = vpop.f32.mrb[77].mxu0 }
 0x1f9   : > { %3410 = vmatmul.mubr.bf16.gmra.mrb[184].mxu1 %v5626_v4  ;;  %v3180_v4 = vsel %vm901_vm1, %v5619_v38, %v3179_v27  ;;  %3731 = vst [vmem:[%s5571_s26 + $0xc8] sm:$0xff] %v2087_v36  ;;  %v4079_v47 = vpop.f32.mrb[78].mxu0 }
 0x1fa   : > { %3416 = vmatprep.mubr.bf16.mxu1 %v3182_v10  ;;  %v4080_v9 = vpop.f32.mrb[79].mxu0 }
 0x1fb   : > { %v4081_v26 = vadd.f32 %v4080_v9, %v4079_v47 }
 0x1fc   : > { %v4170_v58 = vpop.f32.mrb[80].mxu1  ;;  %3093 = vmatmul.mubr.bf16.gmra.mrb[184].mxu0 %v5636_v5 }
 0x1fd   : > { %v4171_v40 = vpop.f32.mrb[81].mxu1  ;;  %v2046_v45 = vadd.f32 %v4169_v15, %v4081_v26  ;;  %3099 = vmatprep.mubr.bf16.mxu0 %v2823_v48 }
 0x1fe   : > { %v4172_v54 = vadd.f32 %v4171_v40, %v4170_v58  ;;  %v4173_v44 = vpop.f32.mrb[82].mxu1 }
 0x1ff   : > { %v4174_v46 = vpop.f32.mrb[83].mxu1  ;;  %v2088_v21 = vadd.f32 %v5563_v31, %v2046_v45  ;;  %v4082_v55 = vpop.f32.mrb[80].mxu0 }
 0x200   : > { %v4083_v63 = vpop.f32.mrb[81].mxu0 }
 0x201   : > { %3417 = vmatmul.mubr.bf16.gmra.mrb[188].mxu1 %v3180_v4  ;;  %3732 = vst [vmem:[%s5571_s26 + $0xd0] sm:$0xff] %v2088_v21  ;;  %v4084_v59 = vadd.f32 %v4083_v63, %v4082_v55  ;;  %v4085_v29 = vpop.f32.mrb[82].mxu0 }
 0x202   : > { %v4086_v52 = vpop.f32.mrb[83].mxu0 }
 0x203   : > { %v2051_v61 = vadd.f32 %v4172_v54, %v4084_v59  ;;  %v5730_v54 = vld [vmem:[%s5849_s2] ss:$0 sm:$0xff] }
 0x204   : > { %v4176_v50 = vpop.f32.mrb[84].mxu1  ;;  %3100 = vmatmul.mubr.bf16.gmra.mrb[188].mxu0 %v5645_v19 }
 0x205   : > { %v4177_v3 = vpop.f32.mrb[85].mxu1  ;;  %v2089_v5 = vadd.f32 %v5563_v31, %v2051_v61 }
 0x206   : > { %v4178_v38 = vadd.f32 %v4177_v3, %v4176_v50  ;;  %v4179_v57 = vpop.f32.mrb[86].mxu1 }
 0x207   : > { %v4180_v41 = vpop.f32.mrb[87].mxu1  ;;  %3733 = vst [vmem:[%s5571_s26 + $0xd8] sm:$0xff] %v2089_v5  ;;  %v4088_v13 = vpop.f32.mrb[84].mxu0 }
 0x208   : > { %v4181_v43 = vadd.f32 %v4180_v41, %v4179_v57  ;;  %v4089_v6 = vpop.f32.mrb[85].mxu0 }
 0x209   : > { %v4090_v42 = vadd.f32 %v4089_v6, %v4088_v13  ;;  %v4091_v35 = vpop.f32.mrb[86].mxu0 }
 0x20a   : > { %v4092_v8 = vpop.f32.mrb[87].mxu0 }
 0x20b   : > { %v2058_v30 = vadd.f32 %v4178_v38, %v4090_v42  ;;  %v4093_v32 = vadd.f32 %v4092_v8, %v4091_v35 }
 0x20c   : > { %v4182_v0 = vpop.f32.mrb[88].mxu1 }
 0x20d   : > { %v4183_v2 = vpop.f32.mrb[89].mxu1  ;;  %v2090_v17 = vadd.f32 %v5563_v31, %v2058_v30  ;;  %v2061_v19 = vadd.f32 %v4181_v43, %v4093_v32 }
 0x20e   : > { %v4185_v62 = vpop.f32.mrb[90].mxu1 }
 0x20f   : > { %v4186_v20 = vpop.f32.mrb[91].mxu1  ;;  %3734 = vst [vmem:[%s5571_s26 + $0xe0] sm:$0xff] %v2090_v17  ;;  %v2091_v60 = vadd.f32 %v5563_v31, %v2061_v19  ;;  %v4094_v11 = vpop.f32.mrb[88].mxu0 }
 0x210   : > { %v4187_v14 = vadd.f32 %v4186_v20, %v4185_v62  ;;  %v4095_v24 = vpop.f32.mrb[89].mxu0 }
 0x211   : > { %3735 = vst [vmem:[%s5571_s26 + $0xe8] sm:$0xff] %v2091_v60  ;;  %v4097_v25 = vpop.f32.mrb[90].mxu0 }
 0x212   : > { %v4098_v10 = vpop.f32.mrb[91].mxu0 }
 0x213   : > { %v4099_v51 = vadd.f32 %v4098_v10, %v4097_v25 }
 0x214   : > { %v4188_v33 = vpop.f32.mrb[92].mxu1 }
 0x215   : > { %v4189_v49 = vpop.f32.mrb[93].mxu1  ;;  %v2068_v16 = vadd.f32 %v4187_v14, %v4099_v51 }
 0x216   : > { %v4190_v18 = vadd.f32 %v4189_v49, %v4188_v33  ;;  %v4191_v37 = vpop.f32.mrb[94].mxu1 }
 0x217   : > { %v4192_v12 = vpop.f32.mrb[95].mxu1  ;;  %v2092_v22 = vadd.f32 %v5563_v31, %v2068_v16  ;;  %v4100_v56 = vpop.f32.mrb[92].mxu0 }
 0x218   : > { %v4101_v27 = vpop.f32.mrb[93].mxu0 }
 0x219   : > { %3736 = vst [vmem:[%s5571_s26 + $0xf0] sm:$0xff] %v2092_v22  ;;  %v4102_v1 = vadd.f32 %v4101_v27, %v4100_v56  ;;  %v4103_v58 = vpop.f32.mrb[94].mxu0 }
 0x21a   : > { %v4104_v36 = vpop.f32.mrb[95].mxu0 }
 0x21b   : > { %v2073_v34 = vadd.f32 %v4190_v18, %v4102_v1 }
 0x21c   : > { %v4298_v7 = vpop.f32.mrb[96].mxu1 }
 0x21d   : > { %v4299_v15 = vpop.f32.mrb[97].mxu1  ;;  %v2093_v44 = vadd.f32 %v5730_v54, %v2073_v34 }
 0x21e   : > { %v4300_v23 = vadd.f32 %v4299_v15, %v4298_v7  ;;  %v4301_v53 = vpop.f32.mrb[98].mxu1 }
 0x21f   : > { %v4302_v28 = vpop.f32.mrb[99].mxu1  ;;  %3737 = vst [vmem:[%s5571_s26 + $0xf8] sm:$0xff] %v2093_v44  ;;  %v4210_v39 = vpop.f32.mrb[96].mxu0 }
 0x220   : > { %v4303_v40 = vadd.f32 %v4302_v28, %v4301_v53  ;;  %v4211_v47 = vpop.f32.mrb[97].mxu0 }
 0x221   : > { %v4212_v48 = vadd.f32 %v4211_v47, %v4210_v39  ;;  %v4213_v26 = vpop.f32.mrb[98].mxu0 }
 0x222   : > { %v4214_v50 = vpop.f32.mrb[99].mxu0 }
 0x223   : > { %v2655_v3 = vadd.f32 %v4300_v23, %v4212_v48  ;;  %v4215_v21 = vadd.f32 %v4214_v50, %v4213_v26 }
 0x224   : > { %v4304_v31 = vpop.f32.mrb[100].mxu1 }
 0x225   : > { %v4305_v4 = vpop.f32.mrb[101].mxu1  ;;  %v2741_v55 = vadd.f32 %v5730_v54, %v2655_v3  ;;  %v2658_v38 = vadd.f32 %v4303_v40, %v4215_v21 }
 0x226   : > { %v4307_v46 = vpop.f32.mrb[102].mxu1 }
 0x227   : > { %v4308_v9 = vpop.f32.mrb[103].mxu1  ;;  %3770 = vst [vmem:[%s5571_s26 + $0x100] sm:$0xff] %v2741_v55  ;;  %v2742_v41 = vadd.f32 %v5730_v54, %v2658_v38  ;;  %v4216_v59 = vpop.f32.mrb[100].mxu0 }
 0x228   : > { %v4309_v45 = vadd.f32 %v4308_v9, %v4307_v46  ;;  %v4217_v52 = vpop.f32.mrb[101].mxu0 }
 0x229   : > { %3771 = vst [vmem:[%s5571_s26 + $0x108] sm:$0xff] %v2742_v41  ;;  %v4219_v5 = vpop.f32.mrb[102].mxu0 }
 0x22a   : > { %v4220_v0 = vpop.f32.mrb[103].mxu0 }
 0x22b   : > { %v4221_v2 = vadd.f32 %v4220_v0, %v4219_v5 }
 0x22c   : > { %v4310_v57 = vpop.f32.mrb[104].mxu1 }
 0x22d   : > { %v4311_v63 = vpop.f32.mrb[105].mxu1  ;;  %v2665_v13 = vadd.f32 %v4309_v45, %v4221_v2 }
 0x22e   : > { %v4312_v29 = vadd.f32 %v4311_v63, %v4310_v57  ;;  %v4313_v43 = vpop.f32.mrb[106].mxu1 }
 0x22f   : > { %v4314_v61 = vpop.f32.mrb[107].mxu1  ;;  %v2743_v20 = vadd.f32 %v5730_v54, %v2665_v13  ;;  %v4222_v42 = vpop.f32.mrb[104].mxu0 }
 0x230   : > { %v4223_v8 = vpop.f32.mrb[105].mxu0 }
 0x231   : > { %3772 = vst [vmem:[%s5571_s26 + $0x110] sm:$0xff] %v2743_v20  ;;  %v4224_v32 = vadd.f32 %v4223_v8, %v4222_v42  ;;  %v4225_v17 = vpop.f32.mrb[106].mxu0 }
 0x232   : > { %v4226_v33 = vpop.f32.mrb[107].mxu0 }
 0x233   : > { %v2670_v49 = vadd.f32 %v4312_v29, %v4224_v32 }
 0x234   : > { %v4316_v62 = vpop.f32.mrb[108].mxu1 }
 0x235   : > { %v4317_v6 = vpop.f32.mrb[109].mxu1  ;;  %v2744_v60 = vadd.f32 %v5730_v54, %v2670_v49 }
 0x236   : > { %v4318_v35 = vadd.f32 %v4317_v6, %v4316_v62  ;;  %v4319_v14 = vpop.f32.mrb[110].mxu1 }
 0x237   : > { %v4320_v30 = vpop.f32.mrb[111].mxu1  ;;  %3773 = vst [vmem:[%s5571_s26 + $0x118] sm:$0xff] %v2744_v60  ;;  %v4228_v37 = vpop.f32.mrb[108].mxu0 }
 0x238   : > { %v4321_v19 = vadd.f32 %v4320_v30, %v4319_v14  ;;  %v4229_v12 = vpop.f32.mrb[109].mxu0 }
 0x239   : > { %v4230_v10 = vadd.f32 %v4229_v12, %v4228_v37  ;;  %v4231_v51 = vpop.f32.mrb[110].mxu0 }
 0x23a   : > { %v4232_v7 = vpop.f32.mrb[111].mxu0 }
 0x23b   : > { %v2677_v15 = vadd.f32 %v4318_v35, %v4230_v10  ;;  %v4233_v22 = vadd.f32 %v4232_v7, %v4231_v51 }
 0x23c   : > { %v4322_v11 = vpop.f32.mrb[112].mxu1 }
 0x23d   : > { %v4323_v18 = vpop.f32.mrb[113].mxu1  ;;  %v2745_v56 = vadd.f32 %v5730_v54, %v2677_v15  ;;  %v2680_v23 = vadd.f32 %v4321_v19, %v4233_v22 }
 0x23e   : > { %v4325_v24 = vpop.f32.mrb[114].mxu1 }
 0x23f   : > { %v4326_v25 = vpop.f32.mrb[115].mxu1  ;;  %3774 = vst [vmem:[%s5571_s26 + $0x120] sm:$0xff] %v2745_v56  ;;  %v2746_v28 = vadd.f32 %v5730_v54, %v2680_v23  ;;  %v4234_v1 = vpop.f32.mrb[112].mxu0 }
 0x240   : > { %v4327_v16 = vadd.f32 %v4326_v25, %v4325_v24  ;;  %v4235_v36 = vpop.f32.mrb[113].mxu0 }
 0x241   : > { %3775 = vst [vmem:[%s5571_s26 + $0x128] sm:$0xff] %v2746_v28  ;;  %v4237_v44 = vpop.f32.mrb[114].mxu0 }
 0x242   : > { %v4238_v31 = vpop.f32.mrb[115].mxu0 }
 0x243   : > { %v4239_v4 = vadd.f32 %v4238_v31, %v4237_v44 }
 0x244   : > { %v4328_v53 = vpop.f32.mrb[116].mxu1 }
 0x245   : > { %v4329_v27 = vpop.f32.mrb[117].mxu1  ;;  %v2687_v39 = vadd.f32 %v4327_v16, %v4239_v4 }
 0x246   : > { %v4330_v58 = vadd.f32 %v4329_v27, %v4328_v53  ;;  %v4331_v40 = vpop.f32.mrb[118].mxu1 }
 0x247   : > { %v4332_v34 = vpop.f32.mrb[119].mxu1  ;;  %v2747_v9 = vadd.f32 %v5730_v54, %v2687_v39  ;;  %v4240_v48 = vpop.f32.mrb[116].mxu0 }
 0x248   : > { %v4241_v50 = vpop.f32.mrb[117].mxu0 }
 0x249   : > { %3776 = vst [vmem:[%s5571_s26 + $0x130] sm:$0xff] %v2747_v9  ;;  %v4242_v21 = vadd.f32 %v4241_v50, %v4240_v48  ;;  %v4243_v55 = vpop.f32.mrb[118].mxu0 }
 0x24a   : > { %v4244_v57 = vpop.f32.mrb[119].mxu0 }
 0x24b   : > { %v2692_v63 = vadd.f32 %v4330_v58, %v4242_v21 }
 0x24c   : > { %v4334_v46 = vpop.f32.mrb[120].mxu1 }
 0x24d   : > { %v4335_v47 = vpop.f32.mrb[121].mxu1  ;;  %v2748_v41 = vadd.f32 %v5730_v54, %v2692_v63 }
 0x24e   : > { %v4336_v26 = vadd.f32 %v4335_v47, %v4334_v46  ;;  %v4337_v45 = vpop.f32.mrb[122].mxu1 }
 0x24f   : > { %v4338_v3 = vpop.f32.mrb[123].mxu1  ;;  %3777 = vst [vmem:[%s5571_s26 + $0x138] sm:$0xff] %v2748_v41  ;;  %v4246_v43 = vpop.f32.mrb[120].mxu0 }
 0x250   : > { %v4339_v38 = vadd.f32 %v4338_v3, %v4337_v45  ;;  %v4247_v61 = vpop.f32.mrb[121].mxu0 }
 0x251   : > { %v4248_v0 = vadd.f32 %v4247_v61, %v4246_v43  ;;  %v4249_v2 = vpop.f32.mrb[122].mxu0 }
 0x252   : > { %v4250_v62 = vpop.f32.mrb[123].mxu0 }
 0x253   : > { %v2699_v6 = vadd.f32 %v4336_v26, %v4248_v0  ;;  %v4251_v20 = vadd.f32 %v4250_v62, %v4249_v2 }
 0x254   : > { %v4340_v59 = vpop.f32.mrb[124].mxu1 }
 0x255   : > { %v4341_v29 = vpop.f32.mrb[125].mxu1  ;;  %v2749_v42 = vadd.f32 %v5730_v54, %v2699_v6  ;;  %v2702_v35 = vadd.f32 %v4339_v38, %v4251_v20 }
 0x256   : > { %v4343_v52 = vpop.f32.mrb[126].mxu1 }
 0x257   : > { %v4344_v5 = vpop.f32.mrb[127].mxu1  ;;  %3778 = vst [vmem:[%s5571_s26 + $0x140] sm:$0xff] %v2749_v42  ;;  %v2750_v30 = vadd.f32 %v5730_v54, %v2702_v35  ;;  %v4252_v32 = vpop.f32.mrb[124].mxu0 }
 0x258   : > { %v4345_v13 = vadd.f32 %v4344_v5, %v4343_v52  ;;  %v4253_v33 = vpop.f32.mrb[125].mxu0 }
 0x259   : > { %3779 = vst [vmem:[%s5571_s26 + $0x148] sm:$0xff] %v2750_v30  ;;  %v4255_v60 = vpop.f32.mrb[126].mxu0 }
 0x25a   : > { %v4256_v11 = vpop.f32.mrb[127].mxu0 }
 0x25b   : > { %v4257_v18 = vadd.f32 %v4256_v11, %v4255_v60 }
 0x25c   : > { %v4346_v14 = vpop.f32.mrb[128].mxu1 }
 0x25d   : > { %v4347_v8 = vpop.f32.mrb[129].mxu1  ;;  %v2709_v37 = vadd.f32 %v4345_v13, %v4257_v18 }
 0x25e   : > { %v4348_v17 = vadd.f32 %v4347_v8, %v4346_v14  ;;  %v4349_v19 = vpop.f32.mrb[130].mxu1 }
 0x25f   : > { %v4350_v49 = vpop.f32.mrb[131].mxu1  ;;  %v2751_v25 = vadd.f32 %v5730_v54, %v2709_v37  ;;  %v4258_v10 = vpop.f32.mrb[128].mxu0 }
 0x260   : > { %v4259_v7 = vpop.f32.mrb[129].mxu0 }
 0x261   : > { %3780 = vst [vmem:[%s5571_s26 + $0x150] sm:$0xff] %v2751_v25  ;;  %v4260_v22 = vadd.f32 %v4259_v7, %v4258_v10  ;;  %v4261_v56 = vpop.f32.mrb[130].mxu0 }
 0x262   : > { %v4262_v53 = vpop.f32.mrb[131].mxu0 }
 0x263   : > { %v2714_v27 = vadd.f32 %v4348_v17, %v4260_v22 }
 0x264   : > { %v4352_v24 = vpop.f32.mrb[132].mxu1 }
 0x265   : > { %v4353_v12 = vpop.f32.mrb[133].mxu1  ;;  %v2752_v28 = vadd.f32 %v5730_v54, %v2714_v27 }
 0x266   : > { %v4354_v51 = vadd.f32 %v4353_v12, %v4352_v24  ;;  %v4355_v16 = vpop.f32.mrb[134].mxu1 }
 0x267   : > { %v4356_v15 = vpop.f32.mrb[135].mxu1  ;;  %3781 = vst [vmem:[%s5571_s26 + $0x158] sm:$0xff] %v2752_v28  ;;  %v4264_v40 = vpop.f32.mrb[132].mxu0 }
 0x268   : > { %v4357_v23 = vadd.f32 %v4356_v15, %v4355_v16  ;;  %v4265_v34 = vpop.f32.mrb[133].mxu0 }
 0x269   : > { %v4266_v31 = vadd.f32 %v4265_v34, %v4264_v40  ;;  %v4267_v4 = vpop.f32.mrb[134].mxu0 }
 0x26a   : > { %v4268_v46 = vpop.f32.mrb[135].mxu0 }
 0x26b   : > { %v2721_v47 = vadd.f32 %v4354_v51, %v4266_v31  ;;  %v4269_v9 = vadd.f32 %v4268_v46, %v4267_v4 }
 0x26c   : > { %v4358_v1 = vpop.f32.mrb[136].mxu1 }
 0x26d   : > { %v4359_v58 = vpop.f32.mrb[137].mxu1  ;;  %v2753_v48 = vadd.f32 %v5730_v54, %v2721_v47  ;;  %v2724_v26 = vadd.f32 %v4357_v23, %v4269_v9 }
 0x26e   : > { %v4361_v36 = vpop.f32.mrb[138].mxu1 }
 0x26f   : > { %v4362_v44 = vpop.f32.mrb[139].mxu1  ;;  %3782 = vst [vmem:[%s5571_s26 + $0x160] sm:$0xff] %v2753_v48  ;;  %v2754_v3 = vadd.f32 %v5730_v54, %v2724_v26  ;;  %v4270_v21 = vpop.f32.mrb[136].mxu0 }
 0x270   : > { %v4363_v39 = vadd.f32 %v4362_v44, %v4361_v36  ;;  %v4271_v57 = vpop.f32.mrb[137].mxu0 }
 0x271   : > { %3783 = vst [vmem:[%s5571_s26 + $0x168] sm:$0xff] %v2754_v3  ;;  %v4273_v41 = vpop.f32.mrb[138].mxu0 }
 0x272   : > { %v4274_v59 = vpop.f32.mrb[139].mxu0 }
 0x273   : > { %v4275_v29 = vadd.f32 %v4274_v59, %v4273_v41 }
 0x274   : > { %v4364_v45 = vpop.f32.mrb[140].mxu1 }
 0x275   : > { %v4365_v50 = vpop.f32.mrb[141].mxu1  ;;  %v2731_v43 = vadd.f32 %v4363_v39, %v4275_v29 }
 0x276   : > { %v4366_v55 = vadd.f32 %v4365_v50, %v4364_v45  ;;  %v4367_v38 = vpop.f32.mrb[142].mxu1 }
 0x277   : > { %v4368_v63 = vpop.f32.mrb[143].mxu1  ;;  %v2755_v5 = vadd.f32 %v5730_v54, %v2731_v43  ;;  %v4276_v0 = vpop.f32.mrb[140].mxu0 }
 0x278   : > { %v4277_v62 = vpop.f32.mrb[141].mxu0 }
 0x279   : > { %3784 = vst [vmem:[%s5571_s26 + $0x170] sm:$0xff] %v2755_v5  ;;  %v4278_v20 = vadd.f32 %v4277_v62, %v4276_v0  ;;  %v4279_v42 = vpop.f32.mrb[142].mxu0 }
 0x27a   : > { %v4280_v14 = vpop.f32.mrb[143].mxu0 }
 0x27b   : > { %v2736_v8 = vadd.f32 %v4366_v55, %v4278_v20 }
 0x27c   : > { %v4474_v52 = vpop.f32.mrb[144].mxu1 }
 0x27d   : > { %v4475_v61 = vpop.f32.mrb[145].mxu1  ;;  %v2756_v30 = vadd.f32 %v5730_v54, %v2736_v8 }
 0x27e   : > { %v4476_v2 = vadd.f32 %v4475_v61, %v4474_v52  ;;  %v4477_v13 = vpop.f32.mrb[146].mxu1 }
 0x27f   : > { %v4478_v6 = vpop.f32.mrb[147].mxu1  ;;  %3785 = vst [vmem:[%s5571_s26 + $0x178] sm:$0xff] %v2756_v30  ;;  %v4386_v19 = vpop.f32.mrb[144].mxu0 }
 0x280   : > { %v4479_v35 = vadd.f32 %v4478_v6, %v4477_v13  ;;  %v4387_v49 = vpop.f32.mrb[145].mxu0 }
 0x281   : > { %v4388_v11 = vadd.f32 %v4387_v49, %v4386_v19  ;;  %v4389_v18 = vpop.f32.mrb[146].mxu0 }
 0x282   : > { %v4390_v24 = vpop.f32.mrb[147].mxu0 }
 0x283   : > { %v3338_v12 = vadd.f32 %v4476_v2, %v4388_v11  ;;  %v4391_v25 = vadd.f32 %v4390_v24, %v4389_v18 }
 0x284   : > { %v4480_v32 = vpop.f32.mrb[148].mxu1 }
 0x285   : > { %v4481_v17 = vpop.f32.mrb[149].mxu1  ;;  %v3424_v10 = vadd.f32 %v5730_v54, %v3338_v12  ;;  %v3341_v51 = vadd.f32 %v4479_v35, %v4391_v25 }
 0x286   : > { %v4483_v33 = vpop.f32.mrb[150].mxu1 }
 0x287   : > { %v4484_v60 = vpop.f32.mrb[151].mxu1  ;;  %3818 = vst [vmem:[%s5571_s26 + $0x180] sm:$0xff] %v3424_v10  ;;  %v3425_v15 = vadd.f32 %v5730_v54, %v3341_v51  ;;  %v4392_v22 = vpop.f32.mrb[148].mxu0 }
 0x288   : > { %v4485_v37 = vadd.f32 %v4484_v60, %v4483_v33  ;;  %v4393_v53 = vpop.f32.mrb[149].mxu0 }
 0x289   : > { %3819 = vst [vmem:[%s5571_s26 + $0x188] sm:$0xff] %v3425_v15  ;;  %v4395_v28 = vpop.f32.mrb[150].mxu0 }
 0x28a   : > { %v4396_v1 = vpop.f32.mrb[151].mxu0 }
 0x28b   : > { %v4397_v58 = vadd.f32 %v4396_v1, %v4395_v28 }
 0x28c   : > { %v4486_v16 = vpop.f32.mrb[152].mxu1 }
 0x28d   : > { %v4487_v7 = vpop.f32.mrb[153].mxu1  ;;  %v3348_v40 = vadd.f32 %v4485_v37, %v4397_v58 }
 0x28e   : > { %v4488_v56 = vadd.f32 %v4487_v7, %v4486_v16  ;;  %v4489_v23 = vpop.f32.mrb[154].mxu1 }
 0x28f   : > { %v4490_v27 = vpop.f32.mrb[155].mxu1  ;;  %v3426_v44 = vadd.f32 %v5730_v54, %v3348_v40  ;;  %v4398_v31 = vpop.f32.mrb[152].mxu0 }
 0x290   : > { %v4399_v46 = vpop.f32.mrb[153].mxu0 }
 0x291   : > { %3820 = vst [vmem:[%s5571_s26 + $0x190] sm:$0xff] %v3426_v44  ;;  %v4400_v9 = vadd.f32 %v4399_v46, %v4398_v31  ;;  %v4401_v48 = vpop.f32.mrb[154].mxu0 }
 0x292   : > { %v4402_v45 = vpop.f32.mrb[155].mxu0 }
 0x293   : > { %v3353_v50 = vadd.f32 %v4488_v56, %v4400_v9 }
 0x294   : > { %v4492_v36 = vpop.f32.mrb[156].mxu1 }
 0x295   : > { %v4493_v34 = vpop.f32.mrb[157].mxu1  ;;  %v3427_v3 = vadd.f32 %v5730_v54, %v3353_v50 }
 0x296   : > { %v4494_v4 = vadd.f32 %v4493_v34, %v4492_v36  ;;  %v4495_v39 = vpop.f32.mrb[158].mxu1 }
 0x297   : > { %v4496_v47 = vpop.f32.mrb[159].mxu1  ;;  %3821 = vst [vmem:[%s5571_s26 + $0x198] sm:$0xff] %v3427_v3  ;;  %v4404_v38 = vpop.f32.mrb[156].mxu0 }
 0x298   : > { %v4497_v26 = vadd.f32 %v4496_v47, %v4495_v39  ;;  %v4405_v63 = vpop.f32.mrb[157].mxu0 }
 0x299   : > { %v4406_v59 = vadd.f32 %v4405_v63, %v4404_v38  ;;  %v4407_v29 = vpop.f32.mrb[158].mxu0 }
 0x29a   : > { %v4408_v52 = vpop.f32.mrb[159].mxu0 }
 0x29b   : > { %v3360_v61 = vadd.f32 %v4494_v4, %v4406_v59  ;;  %v4409_v5 = vadd.f32 %v4408_v52, %v4407_v29 }
 0x29c   : > { %v4498_v21 = vpop.f32.mrb[160].mxu1 }
 0x29d   : > { %v4499_v55 = vpop.f32.mrb[161].mxu1  ;;  %v3428_v0 = vadd.f32 %v5730_v54, %v3360_v61  ;;  %v3363_v2 = vadd.f32 %v4497_v26, %v4409_v5 }
 0x29e   : > { %v4501_v57 = vpop.f32.mrb[162].mxu1 }
 0x29f   : > { %v4502_v41 = vpop.f32.mrb[163].mxu1  ;;  %3822 = vst [vmem:[%s5571_s26 + $0x1a0] sm:$0xff] %v3428_v0  ;;  %v3429_v6 = vadd.f32 %v5730_v54, %v3363_v2  ;;  %v4410_v20 = vpop.f32.mrb[160].mxu0 }
 0x2a0   : > { %v4503_v43 = vadd.f32 %v4502_v41, %v4501_v57  ;;  %v4411_v14 = vpop.f32.mrb[161].mxu0 }
 0x2a1   : > { %3823 = vst [vmem:[%s5571_s26 + $0x1a8] sm:$0xff] %v3429_v6  ;;  %v4413_v30 = vpop.f32.mrb[162].mxu0 }
 0x2a2   : > { %v4414_v32 = vpop.f32.mrb[163].mxu0 }
 0x2a3   : > { %v4415_v17 = vadd.f32 %v4414_v32, %v4413_v30 }
 0x2a4   : > { %v4504_v13 = vpop.f32.mrb[164].mxu1 }
 0x2a5   : > { %v4505_v62 = vpop.f32.mrb[165].mxu1  ;;  %v3370_v19 = vadd.f32 %v4503_v43, %v4415_v17 }
 0x2a6   : > { %v4506_v42 = vadd.f32 %v4505_v62, %v4504_v13  ;;  %v4507_v35 = vpop.f32.mrb[166].mxu1 }
 0x2a7   : > { %v4508_v8 = vpop.f32.mrb[167].mxu1  ;;  %v3430_v60 = vadd.f32 %v5730_v54, %v3370_v19  ;;  %v4416_v11 = vpop.f32.mrb[164].mxu0 }
 0x2a8   : > { %v4417_v24 = vpop.f32.mrb[165].mxu0 }
 0x2a9   : > { %3824 = vst [vmem:[%s5571_s26 + $0x1b0] sm:$0xff] %v3430_v60  ;;  %v4418_v25 = vadd.f32 %v4417_v24, %v4416_v11  ;;  %v4419_v10 = vpop.f32.mrb[166].mxu0 }
 0x2aa   : > { %v4420_v16 = vpop.f32.mrb[167].mxu0 }
 0x2ab   : > { %v3375_v7 = vadd.f32 %v4506_v42, %v4418_v25 }
 0x2ac   : > { %v4510_v33 = vpop.f32.mrb[168].mxu1 }
 0x2ad   : > { %v4511_v49 = vpop.f32.mrb[169].mxu1  ;;  %v3431_v15 = vadd.f32 %v5730_v54, %v3375_v7 }
 0x2ae   : > { %v4512_v18 = vadd.f32 %v4511_v49, %v4510_v33  ;;  %v4513_v37 = vpop.f32.mrb[170].mxu1 }
 0x2af   : > { %v4514_v12 = vpop.f32.mrb[171].mxu1  ;;  %3825 = vst [vmem:[%s5571_s26 + $0x1b8] sm:$0xff] %v3431_v15  ;;  %v4422_v23 = vpop.f32.mrb[168].mxu0 }
 0x2b0   : > { %v4515_v51 = vadd.f32 %v4514_v12, %v4513_v37  ;;  %v4423_v27 = vpop.f32.mrb[169].mxu0 }
 0x2b1   : > { %v4424_v1 = vadd.f32 %v4423_v27, %v4422_v23  ;;  %v4425_v58 = vpop.f32.mrb[170].mxu0 }
 0x2b2   : > { %v4426_v36 = vpop.f32.mrb[171].mxu0 }
 0x2b3   : > { %v3382_v34 = vadd.f32 %v4512_v18, %v4424_v1  ;;  %v4427_v44 = vadd.f32 %v4426_v36, %v4425_v58 }
 0x2b4   : > { %v4516_v22 = vpop.f32.mrb[172].mxu1 }
 0x2b5   : > { %v4517_v56 = vpop.f32.mrb[173].mxu1  ;;  %v3432_v31 = vadd.f32 %v5730_v54, %v3382_v34  ;;  %v3385_v4 = vadd.f32 %v4515_v51, %v4427_v44 }
 0x2b6   : > { %v4519_v53 = vpop.f32.mrb[174].mxu1 }
 0x2b7   : > { %v4520_v28 = vpop.f32.mrb[175].mxu1  ;;  %3826 = vst [vmem:[%s5571_s26 + $0x1c0] sm:$0xff] %v3432_v31  ;;  %v3433_v47 = vadd.f32 %v5730_v54, %v3385_v4  ;;  %v4428_v9 = vpop.f32.mrb[172].mxu0 }
 0x2b8   : > { %v4521_v40 = vadd.f32 %v4520_v28, %v4519_v53  ;;  %v4429_v45 = vpop.f32.mrb[173].mxu0 }
 0x2b9   : > { %3827 = vst [vmem:[%s5571_s26 + $0x1c8] sm:$0xff] %v3433_v47  ;;  %v4431_v3 = vpop.f32.mrb[174].mxu0 }
 0x2ba   : > { %v4432_v21 = vpop.f32.mrb[175].mxu0 }
 0x2bb   : > { %v4433_v55 = vadd.f32 %v4432_v21, %v4431_v3 }
 0x2bc   : > { %v4522_v39 = vpop.f32.mrb[176].mxu1 }
 0x2bd   : > { %v4523_v46 = vpop.f32.mrb[177].mxu1  ;;  %v3392_v38 = vadd.f32 %v4521_v40, %v4433_v55 }
 0x2be   : > { %v4524_v48 = vadd.f32 %v4523_v46, %v4522_v39  ;;  %v4525_v26 = vpop.f32.mrb[178].mxu1 }
 0x2bf   : > { %v4526_v50 = vpop.f32.mrb[179].mxu1  ;;  %v3434_v41 = vadd.f32 %v5730_v54, %v3392_v38  ;;  %v4434_v59 = vpop.f32.mrb[176].mxu0 }
 0x2c0   : > { %v4435_v52 = vpop.f32.mrb[177].mxu0 }
 0x2c1   : > { %3828 = vst [vmem:[%s5571_s26 + $0x1d0] sm:$0xff] %v3434_v41  ;;  %v4436_v5 = vadd.f32 %v4435_v52, %v4434_v59  ;;  %v4437_v0 = vpop.f32.mrb[178].mxu0 }
 0x2c2   : > { %v4438_v13 = vpop.f32.mrb[179].mxu0 }
 0x2c3   : > { %v3397_v62 = vadd.f32 %v4524_v48, %v4436_v5 }
 0x2c4   : > { %v4528_v57 = vpop.f32.mrb[180].mxu1 }
 0x2c5   : > { %v4529_v63 = vpop.f32.mrb[181].mxu1  ;;  %v3435_v6 = vadd.f32 %v5730_v54, %v3397_v62 }
 0x2c6   : > { %v4530_v29 = vadd.f32 %v4529_v63, %v4528_v57  ;;  %v4531_v43 = vpop.f32.mrb[182].mxu1 }
 0x2c7   : > { %v4532_v61 = vpop.f32.mrb[183].mxu1  ;;  %3829 = vst [vmem:[%s5571_s26 + $0x1d8] sm:$0xff] %v3435_v6  ;;  %v4440_v35 = vpop.f32.mrb[180].mxu0 }
 0x2c8   : > { %v4533_v2 = vadd.f32 %v4532_v61, %v4531_v43  ;;  %v4441_v8 = vpop.f32.mrb[181].mxu0 }
 0x2c9   : > { %v4442_v32 = vadd.f32 %v4441_v8, %v4440_v35  ;;  %v4443_v17 = vpop.f32.mrb[182].mxu0 }
 0x2ca   : > { %v4444_v33 = vpop.f32.mrb[183].mxu0 }
 0x2cb   : > { %v3404_v49 = vadd.f32 %v4530_v29, %v4442_v32  ;;  %v4445_v60 = vadd.f32 %v4444_v33, %v4443_v17 }
 0x2cc   : > { %v4534_v20 = vpop.f32.mrb[184].mxu1 }
 0x2cd   : > { %v4535_v42 = vpop.f32.mrb[185].mxu1  ;;  %v3436_v11 = vadd.f32 %v5730_v54, %v3404_v49  ;;  %v3407_v18 = vadd.f32 %v4533_v2, %v4445_v60 }
 0x2ce   : > { %v4537_v14 = vpop.f32.mrb[186].mxu1 }
 0x2cf   : > { %v4538_v30 = vpop.f32.mrb[187].mxu1  ;;  %3830 = vst [vmem:[%s5571_s26 + $0x1e0] sm:$0xff] %v3436_v11  ;;  %v3437_v12 = vadd.f32 %v5730_v54, %v3407_v18  ;;  %v4446_v25 = vpop.f32.mrb[184].mxu0 }
 0x2d0   : > { %v4539_v19 = vadd.f32 %v4538_v30, %v4537_v14  ;;  %v4447_v16 = vpop.f32.mrb[185].mxu0 }
 0x2d1   : > { %3831 = vst [vmem:[%s5571_s26 + $0x1e8] sm:$0xff] %v3437_v12  ;;  %v4449_v15 = vpop.f32.mrb[186].mxu0 }
 0x2d2   : > { %v4450_v22 = vpop.f32.mrb[187].mxu0 }
 0x2d3   : > { %v4451_v56 = vadd.f32 %v4450_v22, %v4449_v15 }
 0x2d4   : > { %v4540_v37 = vpop.f32.mrb[188].mxu1 }
 0x2d5   : > { %v4541_v24 = vpop.f32.mrb[189].mxu1  ;;  %v3414_v23 = vadd.f32 %v4539_v19, %v4451_v56 }
 0x2d6   : > { %v4542_v10 = vadd.f32 %v4541_v24, %v4540_v37  ;;  %v4543_v51 = vpop.f32.mrb[190].mxu1 }
 0x2d7   : > { %v4544_v7 = vpop.f32.mrb[191].mxu1  ;;  %v3438_v53 = vadd.f32 %v5730_v54, %v3414_v23  ;;  %v4452_v27 = vpop.f32.mrb[188].mxu0 }
 0x2d8   : > { %v4453_v28 = vpop.f32.mrb[189].mxu0 }
 0x2d9   : > { %3832 = vst [vmem:[%s5571_s26 + $0x1f0] sm:$0xff] %v3438_v53  ;;  %v4454_v1 = vadd.f32 %v4453_v28, %v4452_v27  ;;  %v4455_v58 = vpop.f32.mrb[190].mxu0 }
 0x2da   : > { %v4456_v40 = vpop.f32.mrb[191].mxu0 }
 0x2db   : > { %v3419_v36 = vadd.f32 %v4542_v10, %v4454_v1 }
 0x2dd   : > { %v3439_v34 = vadd.f32 %v5730_v54, %v3419_v36 }
 0x2df   : > { %3833 = vst [vmem:[%s5571_s26 + $0x1f8] sm:$0xff] %v3439_v34 }
 0x2e0   : > { %s3841_s4 = sshll.u32 %s4953_s15, 4  ;;  %s3837_s5 = sshll.u32 %s4957_s16, 7 }
 0x2e1   : > { %s3471_s28 = sadd.s32 %s3841_s4, %s3837_s5  ;;  %s3490_s7 = sshll.u32 %s5571_s26, 4  ;;  %s3491_s7 = int_to_ptr.vmem [resolvable:$true] %s3490_s7 }
 0x2e2   : > { %s3838_s10 = sshll.u32 %s3471_s28, 7  ;;  %s4975_s20 = smov 2048  }
 0x2e3   : > { %s3473_s11 = scalar_lea.hbm %s5850_s3, %s3838_s10  ;;  %4556 = sst [smem:[#allocation10]] (%p5110_p11), %s4975_s20 }
 0x2e4   : > { %s4976_s17 = smov 4096   ;;  %s4977_s30 = smov 16  }
 0x2e5   : > { %4557 = sst [smem:[#allocation10 + $0x1]] (%p5110_p11), %s4976_s17  ;;  %s4978_s15 = smov 128  }
 0x2e6   : > { %4558 = sst [smem:[#allocation10 + $0x2]] (%p5110_p11), %s4977_s30  ;;  %s4979_s16 = smov 8  }
 0x2e7   : > { %4559 = sst [smem:[#allocation10 + $0x3]] (%p5110_p11), %s4978_s15  ;;  %s4980_s1 = smov [#allocation9]  }
 0x2e8   : > { %4560 = sst [smem:[#allocation10 + $0x4]] (%p5110_p11), %s4978_s15  ;;  %s4981_s22 = smov 0  }
 0x2e9   : > { %4561 = sst [smem:[#allocation10 + $0x5]] (%p5110_p11), %s4979_s16 }
 0x2ea   : > { %4562 = dma.general (%p5110_p11), %s3491_s7, 8192, %s3473_s11, %s3458_s8, %s4980_s1, [#allocation10], %s4981_s22, 0  }
 0x2eb PF: > { %p4579_p6 = scmp.ge.s32.totalorder %s4969_s19, 2  ;;  %s3518_s24 = sand.u32 1, %s4941_s12  }
 0x2ec   : > { %p5879_p8 = scmp.ne.s32.totalorder %s5865_s25, 0  ;;  %s3519_s26 = scalar_lea.sflag [#allocation5], %s3518_s24 }
 0x2ee   : > { %p4573_p10 = pnand %p4579_p6, %p5879_p8 }
 0x2f0   : > { %4936 = dma.done.wait (!%p4573_p10), %s3519_s26, 8192  }
 0x2f1   : > { %4938 = vsyncadd (!%p4573_p10), %s3519_s26, 4294959104  ;;  %s20_s19 = sadd.s32 1, %s4969_s19   ;;  %s5880_s15 = sld [smem:[#allocation14_spill]] }
 0x2f2   : > { %p17_p12 = scmp.ge.s32.totalorder %s20_s19, 6   ;;  %s5881_s17 = sld [smem:[#allocation15_spill]] }
 0x2f3   : > { %s5882_s6 = sld [smem:[#allocation16_spill]]  ;;  %s5883_s12 = smov %s4945_s13 }
 0x2f4   : > { %s5884_s13 = smov %s4949_s14  ;;  %s5885_s14 = smov %s5127_s23 }
 0x2f5   : > { %s5886_s16 = smov %s4965_s18  ;;  %19 = sbr.rel (!%p17_p12) target bundleno = 10 (0xa), region = 96 }
 0x2f9   : > { %s5887_s18 = smov %s5882_s6 }
 0x2fc   :  { %3524 = vsyncpa [#allocation4], 1 }
 0x2fd   :  { %3526 = vsyncpa [#allocation4 + $0x1], 1 }
 0x2fe   :  { %3527 = vsyncpa [#allocation7], 1 }
 0x2ff   :  { %3528 = vsyncpa [#allocation5], 1 }
 0x300   :  { %3530 = vsyncpa [#allocation5 + $0x1], 1 }

</bundles_post_ra>
